<compile_context>
chip_gen: v6e
topology: v6e:2x2x1
jax: 0.10.0
libtpu: 0.0.40
codegen_flags: <defaults>
</compile_context>

<pallas_src>
import functools

import numpy as np
import jax
import jax.numpy as jnp
from jax.experimental import pallas as pl
from jax.experimental.pallas import tpu as pltpu


def _round_up(a: int, b: int) -> int:
    return (a + b - 1) // b * b


def _composed_embedder_kernel(c_ref, x_ref, o_ref, *, scale, offset, g, d, n_bands):
    """One row block: (TM, g*d) packed points -> (TM, g*d*n_bands) embeddings, one store."""
    x = x_ref[...]                                  # (TM, g*d) float32
    consts = c_ref[...]                             # (3, g*d*n_bands)
    freq = consts[0:1, :]                           # per-column frequency
    phase = consts[1:2, :]                          # 0 for sin columns, pi/2 for cos columns
    id_mask = consts[2:3, :]                        # 1.0 on identity columns

    # Repeat each point's d input lanes n_bands times so the column layout matches the
    # PyTorch concat order [identity, sin f0, cos f0, sin f1, cos f1, ...] per point.
    pieces = []
    for p in range(g):
        xp = x[:, p * d:(p + 1) * d]                # (TM, d) static lane slice
        pieces.extend([xp] * n_bands)
    xt = jnp.concatenate(pieces, axis=-1)           # (TM, g*d*n_bands)

    ident = xt * scale + offset                     # identity embedder (cheap, masked in)
    trig = jnp.sin(xt * freq + phase)               # single EUP pass; cos(z) == sin(z+pi/2)
    o_ref[...] = jnp.where(id_mask > 0.5, ident, trig).astype(o_ref.dtype)


def composed_embedder(x, *, scale=2.0, offset=-1.0, n_frequencies=4,
                      tile_rows=1024, out_dtype=jnp.float32):
    """x: (N, D) float32 points. Returns (N, D*(1 + 2*n_frequencies)) embeddings."""
    n, d = x.shape
    f = int(n_frequencies)
    n_bands = 1 + 2 * f
    cols_pp = d * n_bands                                   # 27 for D=3, F=4

    # log_sampling=True, max_freq_log2 = F-1  ->  freqs = 2**[0 .. F-1]
    freqs = [float(2.0 ** i) for i in range(f)]

    # Pack G points per kernel row so the lane axis is nearly dense (G*cols_pp <= 128).
    g = max(1, 128 // cols_pp)

    # Per-column constants for one packed row (G points): frequency, phase, identity mask.
    freq_col = np.ones((cols_pp,), np.float32)
    phase_col = np.zeros((cols_pp,), np.float32)
    mask_col = np.zeros((cols_pp,), np.float32)
    mask_col[:d] = 1.0
    for j, fr in enumerate(freqs):
        base = d * (1 + 2 * j)
        freq_col[base:base + d] = fr                         # sin block
        freq_col[base + d:base + 2 * d] = fr                 # cos block
        phase_col[base + d:base + 2 * d] = np.pi / 2.0
    consts = jnp.asarray(np.stack([np.tile(freq_col, g),
                                   np.tile(phase_col, g),
                                   np.tile(mask_col, g)]))   # (3, g*cols_pp) float32

    # Row padding: pad the point count so rows group evenly and every block is full.
    m = _round_up(n, g) // g                                 # packed rows needed
    block_rows = min(_round_up(max(int(tile_rows), 8), 8), _round_up(m, 8))
    m_pad = _round_up(m, block_rows)
    n_pad = m_pad * g
    x_pad = jnp.pad(x.astype(jnp.float32), ((0, n_pad - n), (0, 0)))
    x_rows = x_pad.reshape(m_pad, g * d)                     # free row-major reshape

    kernel = functools.partial(_composed_embedder_kernel, scale=float(scale),
                               offset=float(offset), g=g, d=d, n_bands=n_bands)
    out_rows = pl.pallas_call(
        kernel,
        out_shape=jax.ShapeDtypeStruct((m_pad, g * cols_pp), out_dtype),
        grid_spec=pltpu.PrefetchScalarGridSpec(
            num_scalar_prefetch=0,
            grid=(m_pad // block_rows,),
            in_specs=[pl.BlockSpec((3, g * cols_pp), lambda i: (0, 0)),
                      pl.BlockSpec((block_rows, g * d), lambda i: (i, 0))],
            out_specs=pl.BlockSpec((block_rows, g * cols_pp), lambda i: (i, 0)),
        ),
        compiler_params=pltpu.CompilerParams(dimension_semantics=("parallel",)),
    )(consts, x_rows)

    # Free reshape back to (N_pad, cols_pp), then drop the padded points.
    return out_rows.reshape(n_pad, cols_pp)[:n]


if __name__ == "__main__":
    key = jax.random.PRNGKey(0)
    N, D = 1000, 3                      # non-multiple point count exercises the padding path
    n_frequencies = 4
    scale, offset = 2.0, -1.0

    x = jax.random.uniform(key, (N, D), dtype=jnp.float32)

    out = composed_embedder(x, scale=scale, offset=offset,
                            n_frequencies=n_frequencies, tile_rows=64)
    out = jax.block_until_ready(out)

    # Pure-JAX reference (mirrors the PyTorch forward exactly).
    freqs = [2.0 ** i for i in range(n_frequencies)]
    ref_parts = [x * scale + offset]
    for fr in freqs:
        ref_parts.append(jnp.sin(x * fr))
        ref_parts.append(jnp.cos(x * fr))
    ref = jnp.concatenate(ref_parts, axis=-1)

    assert out.shape == (N, D * (1 + 2 * n_frequencies)), out.shape
    max_err = float(jnp.max(jnp.abs(out - ref)))
    assert jnp.allclose(out, ref, atol=5e-5), f"kernel mismatch vs reference, max_err={max_err}"
    print("KERNEL_OK")
</pallas_src>

<mosaic_0001>
module attributes {stable_mosaic.version = 11 : i64} {
  func.func @_composed_embedder_kernel(%arg0: i32, %arg1: memref<3x108xf32, #tpu.memory_space<vmem>>, %arg2: memref<64x12xf32, #tpu.memory_space<vmem>>, %arg3: memref<64x108xf32, #tpu.memory_space<vmem>>) attributes {dimension_semantics = [#tpu.dimension_semantics<parallel>], iteration_bounds = array<i64: 4>, scalar_prefetch = 0 : i64, scratch_operands = 0 : i64, tpu.core_type = #tpu.core_type<tc>, window_params = [{pipeline_mode = #tpu.pipeline_mode<synchronous>, transform_indices = @transform_0, window_bounds = array<i64: 3, 108>}, {transform_indices = @transform_1, window_bounds = array<i64: 64, 12>}, {transform_indices = @transform_2, window_bounds = array<i64: 64, 108>}]} {
    %c0 = arith.constant 0 : index
    %c0_0 = arith.constant 0 : index
    %0 = vector.load %arg2[%c0, %c0_0] : memref<64x12xf32, #tpu.memory_space<vmem>>, vector<64x12xf32>
    %c0_1 = arith.constant 0 : index
    %c0_2 = arith.constant 0 : index
    %1 = vector.load %arg1[%c0_1, %c0_2] : memref<3x108xf32, #tpu.memory_space<vmem>>, vector<3x108xf32>
    %2 = vector.extract_strided_slice %1 {offsets = [0, 0], sizes = [1, 108], strides = [1, 1]} : vector<3x108xf32> to vector<1x108xf32>
    %3 = vector.extract_strided_slice %1 {offsets = [1, 0], sizes = [1, 108], strides = [1, 1]} : vector<3x108xf32> to vector<1x108xf32>
    %4 = vector.extract_strided_slice %1 {offsets = [2, 0], sizes = [1, 108], strides = [1, 1]} : vector<3x108xf32> to vector<1x108xf32>
    %5 = vector.extract_strided_slice %0 {offsets = [0, 0], sizes = [64, 3], strides = [1, 1]} : vector<64x12xf32> to vector<64x3xf32>
    %6 = vector.extract_strided_slice %0 {offsets = [0, 3], sizes = [64, 3], strides = [1, 1]} : vector<64x12xf32> to vector<64x3xf32>
    %7 = vector.extract_strided_slice %0 {offsets = [0, 6], sizes = [64, 3], strides = [1, 1]} : vector<64x12xf32> to vector<64x3xf32>
    %8 = vector.extract_strided_slice %0 {offsets = [0, 9], sizes = [64, 3], strides = [1, 1]} : vector<64x12xf32> to vector<64x3xf32>
    %9 = tpu.concatenate %5, %5, %5, %5, %5, %5, %5, %5, %5, %6, %6, %6, %6, %6, %6, %6 in 1 : vector<64x3xf32>, vector<64x3xf32>, vector<64x3xf32>, vector<64x3xf32>, vector<64x3xf32>, vector<64x3xf32>, vector<64x3xf32>, vector<64x3xf32>, vector<64x3xf32>, vector<64x3xf32>, vector<64x3xf32>, vector<64x3xf32>, vector<64x3xf32>, vector<64x3xf32>, vector<64x3xf32>, vector<64x3xf32> -> vector<64x48xf32>
    %10 = tpu.concatenate %6, %6, %7, %7, %7, %7, %7, %7, %7, %7, %7, %8, %8, %8, %8, %8 in 1 : vector<64x3xf32>, vector<64x3xf32>, vector<64x3xf32>, vector<64x3xf32>, vector<64x3xf32>, vector<64x3xf32>, vector<64x3xf32>, vector<64x3xf32>, vector<64x3xf32>, vector<64x3xf32>, vector<64x3xf32>, vector<64x3xf32>, vector<64x3xf32>, vector<64x3xf32>, vector<64x3xf32>, vector<64x3xf32> -> vector<64x48xf32>
    %11 = tpu.concatenate %8, %8, %8, %8 in 1 : vector<64x3xf32>, vector<64x3xf32>, vector<64x3xf32>, vector<64x3xf32> -> vector<64x12xf32>
    %12 = tpu.concatenate %9, %10, %11 in 1 : vector<64x48xf32>, vector<64x48xf32>, vector<64x12xf32> -> vector<64x108xf32>
    %cst = arith.constant 2.000000e+00 : f32
    %13 = vector.broadcast %cst : f32 to vector<64x108xf32>
    %14 = arith.mulf %12, %13 : vector<64x108xf32>
    %cst_3 = arith.constant -1.000000e+00 : f32
    %15 = vector.broadcast %cst_3 : f32 to vector<64x108xf32>
    %16 = arith.addf %14, %15 : vector<64x108xf32>
    %17 = vector.broadcast %2 : vector<1x108xf32> to vector<64x108xf32>
    %18 = arith.mulf %12, %17 : vector<64x108xf32>
    %19 = vector.broadcast %3 : vector<1x108xf32> to vector<64x108xf32>
    %20 = arith.addf %18, %19 : vector<64x108xf32>
    %21 = math.sin %20 : vector<64x108xf32>
    %cst_4 = arith.constant 5.000000e-01 : f32
    %22 = vector.broadcast %cst_4 : f32 to vector<1x108xf32>
    %23 = arith.cmpf ogt, %4, %22 : vector<1x108xf32>
    %24 = vector.shape_cast %23 : vector<1x108xi1> to vector<1x108xi1>
    %25 = vector.broadcast %24 : vector<1x108xi1> to vector<64x108xi1>
    %26 = arith.select %25, %16, %21 : vector<64x108xi1>, vector<64x108xf32>
    %c0_5 = arith.constant 0 : index
    %c0_6 = arith.constant 0 : index
    %27 = vector.load %arg3[%c0_5, %c0_6] : memref<64x108xf32, #tpu.memory_space<vmem>>, vector<64x108xf32>
    tpu.vector_store %arg3[%c0_5, %c0_6], %26 {strides = array<i32>} : memref<64x108xf32, #tpu.memory_space<vmem>>, vector<64x108xf32>,
    return
  }
  func.func @transform_0(%arg0: i32) -> (i32, i32) {
    %c0_i32 = arith.constant 0 : i32
    %c0_i32_0 = arith.constant 0 : i32
    %c0_i32_1 = arith.constant 0 : i32
    return %c0_i32, %c0_i32_0 : i32, i32
  }
  func.func @transform_1(%arg0: i32) -> (i32, i32) {
    %c0_i32 = arith.constant 0 : i32
    %c0_i32_0 = arith.constant 0 : i32
    return %arg0, %c0_i32 : i32, i32
  }
  func.func @transform_2(%arg0: i32) -> (i32, i32) {
    %c0_i32 = arith.constant 0 : i32
    %c0_i32_0 = arith.constant 0 : i32
    return %arg0, %c0_i32 : i32, i32
  }
}

</mosaic_0001>

<bundles_post_ra>
// kernel: tpu_custom_call.1
= control target key start
LH: loop header
LB: loop body
LE: loop exit
PB: predicated region body
PF: predicated region fallthrough
CT: control target
= control target key end

     0   :  { %s2083_s9 = smov 0   ;;  %s3727_s0 = inlined_call_operand.vmem [shape: f32[3,108], index: 0, kind: input, shape index: {}]   ;;  %s3728_s1 = inlined_call_operand.vmem [shape: f32[256,12], index: 1, kind: input, shape index: {}]   ;;  %s3729_s2 = inlined_call_operand.vmem [shape: f32[256,108], index: 2, kind: output, shape index: {}]  }
   0x1 LB: > { %s1885_s10 = sadd.s32 4294967295, %s2040_s9   ;;  %p1889_p0 = scmp.ge.s32.totalorder %s2040_s9, 1  ;;  %s2040_s9 = sphi %s2083_s9, %s12_s9  }
   0x2   : > { %p113_p1 = scmp.lt.s32.totalorder %s2040_s9, 5 }
   0x4   : > { %p114_p2 = pnand %p1889_p0, %p113_p1 }
   0x6   : > { %117 = sbr.rel (%p114_p2) target bundleno = 740 (0x2e4), region = 28 }
   0xb   : > { %s1890_s11 = sshll.u32 %s1885_s10, 3  ;;  %s2042_s16 = smov 3   ;;  %vm500_vm0 = vcmask 23552   ;;  %vm509_vm1 = vcmask 48128   ;;  %vm518_vm2 = vcmask 72704   ;;  %vm527_vm3 = vcmask 97280  }
   0xc   : > { %p136_p3 = scmp.lt.s32.totalorder %s1890_s11, 31  ;;  %s2043_s17 = smov 6   ;;  %vm536_vm4 = vcmask 121856   ;;  %vm545_vm5 = vcmask 146432   ;;  %vm554_vm6 = vcmask 171008   ;;  %vm563_vm7 = vcmask 195584  }
   0xd   : > { %s2044_s18 = smov 9   ;;  %s2045_s19 = smov 12   ;;  %vm572_vm8 = vcmask 220160   ;;  %vm581_vm9 = vcmask 244736   ;;  %vm590_vm10 = vcmask 269312   ;;  %vm599_vm11 = vcmask 293888  }
   0xe   : > { %s3803_s11 = smov (!%p136_p3, %s1890_s11), 31  ;;  %s2046_s20 = smov 15   ;;  %vm608_vm12 = vcmask 318464   ;;  %vm617_vm13 = vcmask 343040   ;;  %vm626_vm14 = vcmask 367616  }
   0xf   : > { %s1891_s12 = sshll.u32 %s3803_s11, 3  ;;  %s2047_s21 = smov 18  }
  0x10   : > { %s2099_s15 = scalar_lea.vmem %s3728_s1, %s1891_s12  ;;  %s2048_s22 = smov 125  }
  0x11   : > { %v2102_v0 = vld [vmem:[%s2099_s15 + $0x10] sm:$0xff]  ;;  %v2105_v1 = vld [vmem:[%s2099_s15] sm:$0xff]  ;;  %v2110_v2 = vld [vmem:[%s2099_s15 + $0x18] sm:$0xff]  ;;  %s2049_s23 = smov 21   ;;  %s2050_s24 = smov 24  }
  0x12   : > { %168 = vrot.lane.b32.xlu1 %v2102_v0, %s2042_s16  ;;  %164 = vrot.lane.b32.xlu0 %v2105_v1, %s2042_s16  ;;  %v2113_v3 = vld [vmem:[%s2099_s15 + $0x8] sm:$0xff]  ;;  %v2121_v5 = vld [vmem:[%s2099_s15 + $0x20] sm:$0xff]  ;;  %s2051_s25 = smov 27   ;;  %s2052_s26 = smov 30  }
  0x13   : > { %v2118_v4 = vld [vmem:[%s2099_s15 + $0x28] sm:$0xff]  ;;  %v2126_v6 = vld [vmem:[%s2099_s15 + $0x38] sm:$0xff]  ;;  %v2129_v7 = vld [vmem:[%s2099_s15 + $0x30] sm:$0xff]  ;;  %s2053_s27 = smov 33   ;;  %s2054_s28 = smov 119  }
  0x14   : > { %s2055_s29 = smov 122   ;;  %s2056_s30 = smov 36  }
  0x15   : > { %s2057_s3 = smov 39   ;;  %s2058_s4 = smov 42  }
  0x16   : > { %170 = vrot.lane.b32.xlu1 %v2110_v2, %s2042_s16  ;;  %166 = vrot.lane.b32.xlu0 %v2113_v3, %s2042_s16  ;;  %s2059_s5 = smov 48   ;;  %s2061_s8 = smov 96  }
  0x17   : > { %s3346_s14 = scalar_lea.vmem %s3729_s2, %s1891_s12 }
  0x1a   : > { %174 = vrot.lane.b32.xlu1 %v2118_v4, %s2042_s16  ;;  %172 = vrot.lane.b32.xlu0 %v2121_v5, %s2042_s16 }
  0x1e   : > { %178 = vrot.lane.b32.xlu1 %v2126_v6, %s2042_s16  ;;  %176 = vrot.lane.b32.xlu0 %v2129_v7, %s2042_s16 }
  0x22   : > { %190 = vrot.lane.b32.xlu1 %v2113_v3, %s2043_s17  ;;  %188 = vrot.lane.b32.xlu0 %v2105_v1, %s2043_s17 }
  0x26   : > { %194 = vrot.lane.b32.xlu1 %v2110_v2, %s2043_s17  ;;  %192 = vrot.lane.b32.xlu0 %v2102_v0, %s2043_s17 }
  0x2a   : > { %198 = vrot.lane.b32.xlu1 %v2118_v4, %s2043_s17  ;;  %196 = vrot.lane.b32.xlu0 %v2121_v5, %s2043_s17 }
  0x2e   : > { %202 = vrot.lane.b32.xlu1 %v2126_v6, %s2043_s17  ;;  %200 = vrot.lane.b32.xlu0 %v2129_v7, %s2043_s17 }
  0x32   : > { %214 = vrot.lane.b32.xlu1 %v2113_v3, %s2044_s18  ;;  %212 = vrot.lane.b32.xlu0 %v2105_v1, %s2044_s18 }
  0x36   : > { %218 = vrot.lane.b32.xlu1 %v2110_v2, %s2044_s18  ;;  %216 = vrot.lane.b32.xlu0 %v2102_v0, %s2044_s18 }
  0x3a   : > { %222 = vrot.lane.b32.xlu1 %v2118_v4, %s2044_s18  ;;  %220 = vrot.lane.b32.xlu0 %v2121_v5, %s2044_s18 }
  0x3e   : > { %226 = vrot.lane.b32.xlu1 %v2126_v6, %s2044_s18  ;;  %224 = vrot.lane.b32.xlu0 %v2129_v7, %s2044_s18 }
  0x42   : > { %238 = vrot.lane.b32.xlu1 %v2113_v3, %s2045_s19  ;;  %236 = vrot.lane.b32.xlu0 %v2105_v1, %s2045_s19 }
  0x46   : > { %242 = vrot.lane.b32.xlu1 %v2110_v2, %s2045_s19  ;;  %240 = vrot.lane.b32.xlu0 %v2102_v0, %s2045_s19 }
  0x4a   : > { %246 = vrot.lane.b32.xlu1 %v2118_v4, %s2045_s19  ;;  %244 = vrot.lane.b32.xlu0 %v2121_v5, %s2045_s19 }
  0x4e   : > { %250 = vrot.lane.b32.xlu1 %v2126_v6, %s2045_s19  ;;  %248 = vrot.lane.b32.xlu0 %v2129_v7, %s2045_s19 }
  0x52   : > { %262 = vrot.lane.b32.xlu1 %v2113_v3, %s2046_s20  ;;  %260 = vrot.lane.b32.xlu0 %v2105_v1, %s2046_s20 }
  0x56   : > { %266 = vrot.lane.b32.xlu1 %v2110_v2, %s2046_s20  ;;  %264 = vrot.lane.b32.xlu0 %v2102_v0, %s2046_s20 }
  0x5a   : > { %270 = vrot.lane.b32.xlu1 %v2118_v4, %s2046_s20  ;;  %268 = vrot.lane.b32.xlu0 %v2121_v5, %s2046_s20 }
  0x5e   : > { %274 = vrot.lane.b32.xlu1 %v2126_v6, %s2046_s20  ;;  %272 = vrot.lane.b32.xlu0 %v2129_v7, %s2046_s20 }
  0x62   : > { %286 = vrot.lane.b32.xlu1 %v2113_v3, %s2047_s21  ;;  %284 = vrot.lane.b32.xlu0 %v2105_v1, %s2047_s21 }
  0x66   : > { %637 = vrot.lane.b32.xlu1 %v2113_v3, %s2048_s22  ;;  %635 = vrot.lane.b32.xlu0 %v2105_v1, %s2048_s22 }
  0x6a   : > { %641 = vrot.lane.b32.xlu1 %v2110_v2, %s2048_s22  ;;  %639 = vrot.lane.b32.xlu0 %v2102_v0, %s2048_s22 }
  0x6e   : > { %645 = vrot.lane.b32.xlu1 %v2118_v4, %s2048_s22  ;;  %643 = vrot.lane.b32.xlu0 %v2121_v5, %s2048_s22 }
  0x72   : > { %649 = vrot.lane.b32.xlu1 %v2126_v6, %s2048_s22  ;;  %647 = vrot.lane.b32.xlu0 %v2129_v7, %s2048_s22 }
  0x76   : > { %290 = vrot.lane.b32.xlu1 %v2110_v2, %s2047_s21  ;;  %288 = vrot.lane.b32.xlu0 %v2102_v0, %s2047_s21 }
  0x7a   : > { %294 = vrot.lane.b32.xlu1 %v2118_v4, %s2047_s21  ;;  %292 = vrot.lane.b32.xlu0 %v2121_v5, %s2047_s21 }
  0x7e   : > { %298 = vrot.lane.b32.xlu1 %v2126_v6, %s2047_s21  ;;  %296 = vrot.lane.b32.xlu0 %v2129_v7, %s2047_s21 }
  0x82   : > { %310 = vrot.lane.b32.xlu1 %v2113_v3, %s2049_s23  ;;  %308 = vrot.lane.b32.xlu0 %v2105_v1, %s2049_s23 }
  0x84   : > { %v2183_v8 = vpop.permute.xlu1 %168  ;;  %v2185_v9 = vpop.permute.xlu0 %164 }
  0x85   : > { %v501_v40 = vsel %vm500_vm0, %v2105_v1, %v2185_v9  ;;  %v503_v50 = vsel %vm500_vm0, %v2102_v0, %v2183_v8 }
  0x86   : > { %314 = vrot.lane.b32.xlu1 %v2110_v2, %s2049_s23  ;;  %312 = vrot.lane.b32.xlu0 %v2102_v0, %s2049_s23 }
  0x88   : > { %v2189_v10 = vpop.permute.xlu1 %170  ;;  %v2191_v11 = vpop.permute.xlu0 %166 }
  0x89   : > { %v502_v41 = vsel %vm500_vm0, %v2113_v3, %v2191_v11  ;;  %v504_v51 = vsel %vm500_vm0, %v2110_v2, %v2189_v10 }
  0x8a   : > { %318 = vrot.lane.b32.xlu1 %v2118_v4, %s2049_s23  ;;  %316 = vrot.lane.b32.xlu0 %v2121_v5, %s2049_s23 }
  0x8c   : > { %v2195_v12 = vpop.permute.xlu1 %174  ;;  %v2197_v13 = vpop.permute.xlu0 %172 }
  0x8d   : > { %v506_v62 = vsel %vm500_vm0, %v2118_v4, %v2195_v12  ;;  %v505_v63 = vsel %vm500_vm0, %v2121_v5, %v2197_v13 }
  0x8e   : > { %322 = vrot.lane.b32.xlu1 %v2126_v6, %s2049_s23  ;;  %320 = vrot.lane.b32.xlu0 %v2129_v7, %s2049_s23 }
  0x90   : > { %v2201_v14 = vpop.permute.xlu1 %178  ;;  %v2203_v15 = vpop.permute.xlu0 %176 }
  0x92   : > { %334 = vrot.lane.b32.xlu1 %v2113_v3, %s2050_s24  ;;  %332 = vrot.lane.b32.xlu0 %v2105_v1, %s2050_s24 }
  0x94   : > { %v2207_v16 = vpop.permute.xlu1 %190  ;;  %v2209_v17 = vpop.permute.xlu0 %188 }
  0x95   : > { %v511_v42 = vsel %vm509_vm1, %v502_v41, %v2207_v16  ;;  %v510_v43 = vsel %vm509_vm1, %v501_v40, %v2209_v17 }
  0x96   : > { %338 = vrot.lane.b32.xlu1 %v2110_v2, %s2050_s24  ;;  %336 = vrot.lane.b32.xlu0 %v2102_v0, %s2050_s24 }
  0x98   : > { %v2213_v18 = vpop.permute.xlu1 %194  ;;  %v2215_v19 = vpop.permute.xlu0 %192 }
  0x99   : > { %v513_v54 = vsel %vm509_vm1, %v504_v51, %v2213_v18  ;;  %v512_v55 = vsel %vm509_vm1, %v503_v50, %v2215_v19 }
  0x9a   : > { %342 = vrot.lane.b32.xlu1 %v2118_v4, %s2050_s24  ;;  %340 = vrot.lane.b32.xlu0 %v2121_v5, %s2050_s24 }
  0x9c   : > { %v2219_v20 = vpop.permute.xlu1 %198  ;;  %v2221_v21 = vpop.permute.xlu0 %196 }
  0x9e   : > { %346 = vrot.lane.b32.xlu1 %v2126_v6, %s2050_s24  ;;  %344 = vrot.lane.b32.xlu0 %v2129_v7, %s2050_s24 }
  0xa0   : > { %v2225_v22 = vpop.permute.xlu1 %202  ;;  %v2227_v23 = vpop.permute.xlu0 %200 }
  0xa2   : > { %358 = vrot.lane.b32.xlu1 %v2113_v3, %s2051_s25  ;;  %356 = vrot.lane.b32.xlu0 %v2105_v1, %s2051_s25 }
  0xa4   : > { %v2231_v24 = vpop.permute.xlu1 %214  ;;  %v2233_v25 = vpop.permute.xlu0 %212 }
  0xa5   : > { %v520_v44 = vsel %vm518_vm2, %v511_v42, %v2231_v24  ;;  %v519_v45 = vsel %vm518_vm2, %v510_v43, %v2233_v25  ;;  %v515_v42 = vsel %vm509_vm1, %v506_v62, %v2219_v20  ;;  %v514_v43 = vsel %vm509_vm1, %v505_v63, %v2221_v21 }
  0xa6   : > { %362 = vrot.lane.b32.xlu1 %v2110_v2, %s2051_s25  ;;  %360 = vrot.lane.b32.xlu0 %v2102_v0, %s2051_s25 }
  0xa8   : > { %v2237_v26 = vpop.permute.xlu1 %218  ;;  %v2239_v27 = vpop.permute.xlu0 %216 }
  0xa9   : > { %v522_v56 = vsel %vm518_vm2, %v513_v54, %v2237_v26  ;;  %v521_v57 = vsel %vm518_vm2, %v512_v55, %v2239_v27  ;;  %v508_v54 = vsel %vm500_vm0, %v2126_v6, %v2201_v14  ;;  %v507_v55 = vsel %vm500_vm0, %v2129_v7, %v2203_v15 }
  0xaa   : > { %366 = vrot.lane.b32.xlu1 %v2118_v4, %s2051_s25  ;;  %364 = vrot.lane.b32.xlu0 %v2121_v5, %s2051_s25 }
  0xac   : > { %v2243_v28 = vpop.permute.xlu1 %222  ;;  %v2245_v29 = vpop.permute.xlu0 %220 }
  0xad   : > { %3750 = vst [vmem:[#allocation2_spill] sm:$0xff] %v2243_v28  ;;  %3751 = vst [vmem:[#allocation3_spill] sm:$0xff] %v2245_v29 }
  0xae   : > { %370 = vrot.lane.b32.xlu1 %v2126_v6, %s2051_s25  ;;  %368 = vrot.lane.b32.xlu0 %v2129_v7, %s2051_s25 }
  0xb0   : > { %v2249_v30 = vpop.permute.xlu1 %226  ;;  %v2251_v31 = vpop.permute.xlu0 %224 }
  0xb2   : > { %382 = vrot.lane.b32.xlu1 %v2113_v3, %s2052_s26  ;;  %380 = vrot.lane.b32.xlu0 %v2105_v1, %s2052_s26 }
  0xb4   : > { %v2255_v32 = vpop.permute.xlu1 %238  ;;  %v2257_v33 = vpop.permute.xlu0 %236 }
  0xb5   : > { %v529_v46 = vsel %vm527_vm3, %v520_v44, %v2255_v32  ;;  %v528_v47 = vsel %vm527_vm3, %v519_v45, %v2257_v33  ;;  %v524_v44 = vsel %vm518_vm2, %v515_v42, %v2243_v28  ;;  %v523_v45 = vsel %vm518_vm2, %v514_v43, %v2245_v29 }
  0xb6   : > { %386 = vrot.lane.b32.xlu1 %v2110_v2, %s2052_s26  ;;  %384 = vrot.lane.b32.xlu0 %v2102_v0, %s2052_s26 }
  0xb8   : > { %v2261_v34 = vpop.permute.xlu1 %242  ;;  %v2263_v35 = vpop.permute.xlu0 %240 }
  0xb9   : > { %v531_v58 = vsel %vm527_vm3, %v522_v56, %v2261_v34  ;;  %v530_v59 = vsel %vm527_vm3, %v521_v57, %v2263_v35 }
  0xba   : > { %390 = vrot.lane.b32.xlu1 %v2118_v4, %s2052_s26  ;;  %388 = vrot.lane.b32.xlu0 %v2121_v5, %s2052_s26 }
  0xbc   : > { %v2267_v36 = vpop.permute.xlu1 %246  ;;  %v2269_v37 = vpop.permute.xlu0 %244 }
  0xbd   : > { %3752 = vst [vmem:[#allocation4_spill] sm:$0xff] %v2267_v36  ;;  %3753 = vst [vmem:[#allocation5_spill] sm:$0xff] %v2269_v37 }
  0xbe   : > { %394 = vrot.lane.b32.xlu1 %v2126_v6, %s2052_s26  ;;  %392 = vrot.lane.b32.xlu0 %v2129_v7, %s2052_s26 }
  0xc0   : > { %v2273_v38 = vpop.permute.xlu1 %250  ;;  %v2275_v39 = vpop.permute.xlu0 %248 }
  0xc2   : > { %406 = vrot.lane.b32.xlu1 %v2113_v3, %s2053_s27  ;;  %404 = vrot.lane.b32.xlu0 %v2105_v1, %s2053_s27 }
  0xc4   : > { %v2299_v48 = vpop.permute.xlu1 %262  ;;  %v2301_v49 = vpop.permute.xlu0 %260 }
  0xc5   : > { %v538_v52 = vsel %vm536_vm4, %v529_v46, %v2299_v48  ;;  %v537_v53 = vsel %vm536_vm4, %v528_v47, %v2301_v49  ;;  %v533_v46 = vsel %vm527_vm3, %v524_v44, %v2267_v36  ;;  %v532_v47 = vsel %vm527_vm3, %v523_v45, %v2269_v37 }
  0xc6   : > { %410 = vrot.lane.b32.xlu1 %v2110_v2, %s2053_s27  ;;  %408 = vrot.lane.b32.xlu0 %v2102_v0, %s2053_s27 }
  0xc8   : > { %v2329_v60 = vpop.permute.xlu1 %266  ;;  %v2331_v61 = vpop.permute.xlu0 %264 }
  0xc9   : > { %3754 = vst [vmem:[#allocation6_spill] sm:$0xff] %v2329_v60  ;;  %3755 = vst [vmem:[#allocation7_spill] sm:$0xff] %v2331_v61  ;;  %v540_v40 = vsel %vm536_vm4, %v531_v58, %v2329_v60  ;;  %v539_v41 = vsel %vm536_vm4, %v530_v59, %v2331_v61  ;;  %v517_v58 = vsel %vm509_vm1, %v508_v54, %v2225_v22 }
  0xca   : > { %414 = vrot.lane.b32.xlu1 %v2118_v4, %s2053_s27  ;;  %412 = vrot.lane.b32.xlu0 %v2121_v5, %s2053_s27  ;;  %v516_v59 = vsel %vm509_vm1, %v507_v55, %v2227_v23  ;;  %v526_v62 = vsel %vm518_vm2, %v517_v58, %v2249_v30 }
  0xcb   : > { %v525_v63 = vsel %vm518_vm2, %v516_v59, %v2251_v31  ;;  %v535_v42 = vsel %vm527_vm3, %v526_v62, %v2273_v38 }
  0xcc   : > { %v2359_v50 = vpop.permute.xlu1 %270  ;;  %v2361_v51 = vpop.permute.xlu0 %268  ;;  %v534_v43 = vsel %vm527_vm3, %v525_v63, %v2275_v39 }
  0xcd   : > { %3756 = vst [vmem:[#allocation8_spill] sm:$0xff] %v2359_v50  ;;  %3757 = vst [vmem:[#allocation9_spill] sm:$0xff] %v2361_v51  ;;  %v542_v56 = vsel %vm536_vm4, %v533_v46, %v2359_v50  ;;  %v541_v57 = vsel %vm536_vm4, %v532_v47, %v2361_v51 }
  0xce   : > { %418 = vrot.lane.b32.xlu1 %v2126_v6, %s2053_s27  ;;  %416 = vrot.lane.b32.xlu0 %v2129_v7, %s2053_s27 }
  0xd0   : > { %v2389_v44 = vpop.permute.xlu1 %274  ;;  %v2391_v45 = vpop.permute.xlu0 %272 }
  0xd1   : > { %v544_v46 = vsel %vm536_vm4, %v535_v42, %v2389_v44  ;;  %v543_v47 = vsel %vm536_vm4, %v534_v43, %v2391_v45 }
  0xd2   : > { %781 = vrot.lane.b32.xlu1 %v2113_v3, %s2054_s28  ;;  %779 = vrot.lane.b32.xlu0 %v2105_v1, %s2054_s28 }
  0xd4   : > { %v2399_v54 = vpop.permute.xlu1 %286  ;;  %v2401_v55 = vpop.permute.xlu0 %284 }
  0xd5   : > { %3758 = vst [vmem:[#allocation10_spill] sm:$0xff] %v2399_v54  ;;  %3759 = vst [vmem:[#allocation11_spill] sm:$0xff] %v2401_v55  ;;  %v2405_v58 = vsel %vm545_vm5, %v538_v52, %v2399_v54  ;;  %v2409_v59 = vsel %vm545_vm5, %v537_v53, %v2401_v55 }
  0xd6   : > { %785 = vrot.lane.b32.xlu1 %v2110_v2, %s2054_s28  ;;  %783 = vrot.lane.b32.xlu0 %v2102_v0, %s2054_s28 }
  0xd8   : > { %v2413_v62 = vpop.permute.xlu1 %637  ;;  %v2415_v63 = vpop.permute.xlu0 %635 }
  0xd9   : > { %3760 = vst [vmem:[#allocation12_spill] sm:$0xff] %v2413_v62  ;;  %3761 = vst [vmem:[#allocation13_spill] sm:$0xff] %v2415_v63  ;;  %v660_v61 = vsel %vm500_vm0, %v2413_v62, %v2113_v3  ;;  %v659_v60 = vsel %vm500_vm0, %v2415_v63, %v2105_v1 }
  0xda   : > { %789 = vrot.lane.b32.xlu1 %v2118_v4, %s2054_s28  ;;  %787 = vrot.lane.b32.xlu0 %v2121_v5, %s2054_s28  ;;  %v668_v63 = vsel %vm509_vm1, %v660_v61, %v2113_v3 }
  0xdc   : > { %v2419_v42 = vpop.permute.xlu1 %641  ;;  %v2421_v52 = vpop.permute.xlu0 %639 }
  0xdd   : > { %3762 = vst [vmem:[#allocation14_spill] sm:$0xff] %v2419_v42  ;;  %3763 = vst [vmem:[#allocation15_spill] sm:$0xff] %v2421_v52 }
  0xde   : > { %793 = vrot.lane.b32.xlu1 %v2126_v6, %s2054_s28  ;;  %791 = vrot.lane.b32.xlu0 %v2129_v7, %s2054_s28 }
  0xe0   : > { %v2425_v53 = vpop.permute.xlu1 %645  ;;  %v2427_v43 = vpop.permute.xlu0 %643 }
  0xe2   : > { %805 = vrot.lane.b32.xlu1 %v2113_v3, %s2055_s29  ;;  %803 = vrot.lane.b32.xlu0 %v2105_v1, %s2055_s29 }
  0xe4   : > { %v2431_v51 = vpop.permute.xlu1 %649  ;;  %v2433_v50 = vpop.permute.xlu0 %647 }
  0xe5   : > { %3764 = vst [vmem:[#allocation16_spill] sm:$0xff] %v2431_v51  ;;  %3765 = vst [vmem:[#allocation17_spill] sm:$0xff] %v2433_v50 }
  0xe6   : > { %809 = vrot.lane.b32.xlu1 %v2110_v2, %s2055_s29  ;;  %807 = vrot.lane.b32.xlu0 %v2102_v0, %s2055_s29 }
  0xe8   : > { %v2437_v37 = vpop.permute.xlu1 %290  ;;  %v2439_v36 = vpop.permute.xlu0 %288 }
  0xe9   : > { %3766 = vst [vmem:[#allocation18_spill] sm:$0xff] %v2437_v37  ;;  %3767 = vst [vmem:[#allocation19_spill] sm:$0xff] %v2439_v36  ;;  %v549_v55 = vsel %vm545_vm5, %v540_v40, %v2437_v37  ;;  %v548_v54 = vsel %vm545_vm5, %v539_v41, %v2439_v36  ;;  %v666_v40 = vsel %vm500_vm0, %v2431_v51, %v2126_v6 }
  0xea   : > { %813 = vrot.lane.b32.xlu1 %v2118_v4, %s2055_s29  ;;  %811 = vrot.lane.b32.xlu0 %v2121_v5, %s2055_s29  ;;  %v665_v41 = vsel %vm500_vm0, %v2433_v50, %v2129_v7  ;;  %v667_v37 = vsel %vm509_vm1, %v659_v60, %v2105_v1  ;;  %v662_v50 = vsel %vm500_vm0, %v2419_v42, %v2110_v2 }
  0xeb   : > { %v673_v61 = vsel %vm509_vm1, %v665_v41, %v2129_v7  ;;  %v675_v42 = vsel %vm518_vm2, %v667_v37, %v2185_v9  ;;  %v670_v41 = vsel %vm509_vm1, %v662_v50, %v2110_v2 }
  0xec   : > { %v2453_v29 = vpop.permute.xlu1 %294  ;;  %v2455_v28 = vpop.permute.xlu0 %292  ;;  %v683_v50 = vsel %vm527_vm3, %v675_v42, %v2209_v17 }
  0xed   : > { %3768 = vst [vmem:[#allocation20_spill] sm:$0xff] %v2453_v29  ;;  %3769 = vst [vmem:[#allocation21_spill] sm:$0xff] %v2455_v28  ;;  %v2465_v36 = vsel %vm545_vm5, %v542_v56, %v2453_v29  ;;  %v2469_v62 = vsel %vm545_vm5, %v541_v57, %v2455_v28  ;;  %v661_v56 = vsel %vm500_vm0, %v2421_v52, %v2102_v0 }
  0xee   : > { %817 = vrot.lane.b32.xlu1 %v2126_v6, %s2055_s29  ;;  %815 = vrot.lane.b32.xlu0 %v2129_v7, %s2055_s29  ;;  %v674_v57 = vsel %vm509_vm1, %v666_v40, %v2126_v6  ;;  %v676_v28 = vsel %vm518_vm2, %v668_v63, %v2191_v11  ;;  %v669_v52 = vsel %vm509_vm1, %v661_v56, %v2102_v0 }
  0xef   : > { %v682_v9 = vsel %vm518_vm2, %v674_v57, %v2201_v14  ;;  %v681_v11 = vsel %vm518_vm2, %v673_v61, %v2203_v15  ;;  %v684_v37 = vsel %vm527_vm3, %v676_v28, %v2207_v16  ;;  %v678_v15 = vsel %vm518_vm2, %v670_v41, %v2189_v10 }
  0xf0   : > { %v2487_v51 = vpop.permute.xlu1 %298  ;;  %v2489_v60 = vpop.permute.xlu0 %296  ;;  %v677_v16 = vsel %vm518_vm2, %v669_v52, %v2183_v8  ;;  %v690_v42 = vsel %vm527_vm3, %v682_v9, %v2225_v22  ;;  %v689_v56 = vsel %vm527_vm3, %v681_v11, %v2227_v23  ;;  %v692_v23 = vsel %vm536_vm4, %v684_v37, %v2231_v24  ;;  %v3771_v37 = vld [vmem:[#allocation3_spill] sm:$0xff] }
  0xf1   : > { %v2497_v29 = vsel %vm545_vm5, %v544_v46, %v2487_v51  ;;  %v2501_v40 = vsel %vm545_vm5, %v543_v47, %v2489_v60  ;;  %v664_v46 = vsel %vm500_vm0, %v2425_v53, %v2118_v4  ;;  %v663_v47 = vsel %vm500_vm0, %v2427_v43, %v2121_v5 }
  0xf2   : > { %430 = vrot.lane.b32.xlu1 %v2113_v3, %s2056_s30  ;;  %428 = vrot.lane.b32.xlu0 %v2105_v1, %s2056_s30  ;;  %v672_v8 = vsel %vm509_vm1, %v664_v46, %v2118_v4  ;;  %v671_v10 = vsel %vm509_vm1, %v663_v47, %v2121_v5  ;;  %v685_v22 = vsel %vm527_vm3, %v677_v16, %v2215_v19 }
  0xf3   : > { %v698_v61 = vsel %vm536_vm4, %v690_v42, %v2249_v30  ;;  %v697_v41 = vsel %vm536_vm4, %v689_v56, %v2251_v31  ;;  %v680_v24 = vsel %vm518_vm2, %v672_v8, %v2195_v12  ;;  %v700_v30 = vsel %vm545_vm5, %v692_v23, %v2255_v32  ;;  %v3775_v8 = vld [vmem:[#allocation11_spill] sm:$0xff]  ;;  %v3777_v23 = vld [vmem:[#allocation5_spill] sm:$0xff] }
  0xf4   : > { %v2525_v63 = vpop.permute.xlu1 %310  ;;  %v2527_v14 = vpop.permute.xlu0 %308  ;;  %v693_v12 = vsel %vm536_vm4, %v685_v22, %v2239_v27  ;;  %v688_v32 = vsel %vm527_vm3, %v680_v24, %v2219_v20 }
  0xf5   : > { %v2536_v17 = vsel %vm554_vm6, %v2405_v58, %v2525_v63  ;;  %v2541_v28 = vsel %vm554_vm6, %v2409_v59, %v2527_v14  ;;  %v686_v58 = vsel %vm527_vm3, %v678_v15, %v2213_v18  ;;  %v691_v59 = vsel %vm536_vm4, %v683_v50, %v2233_v25 }
  0xf6   : > { %434 = vrot.lane.b32.xlu1 %v2110_v2, %s2056_s30  ;;  %432 = vrot.lane.b32.xlu0 %v2102_v0, %s2056_s30  ;;  %v679_v25 = vsel %vm518_vm2, %v671_v10, %v2197_v13  ;;  %v699_v31 = vsel %vm545_vm5, %v691_v59, %v2257_v33  ;;  %v706_v13 = vsel %vm545_vm5, %v698_v61, %v2273_v38 }
  0xf7   : > { %v687_v33 = vsel %vm527_vm3, %v679_v25, %v2221_v21  ;;  %v708_v38 = vsel %vm554_vm6, %v700_v30, %v2299_v48  ;;  %v707_v20 = vsel %vm554_vm6, %v699_v31, %v2301_v49 }
  0xf8   : > { %v2563_v52 = vpop.permute.xlu1 %314  ;;  %v2565_v57 = vpop.permute.xlu0 %312  ;;  %v695_v50 = vsel %vm536_vm4, %v687_v33, %v3771_v37  ;;  %v715_v10 = vsel %vm563_vm7, %v707_v20, %v3775_v8 }
  0xf9   : > { %v2573_v18 = vsel %vm554_vm6, %v549_v55, %v2563_v52  ;;  %v2577_v19 = vsel %vm554_vm6, %v548_v54, %v2565_v57  ;;  %v694_v54 = vsel %vm536_vm4, %v686_v58, %v2237_v26  ;;  %v705_v55 = vsel %vm545_vm5, %v697_v41, %v2275_v39  ;;  %v3776_v58 = vld [vmem:[#allocation4_spill] sm:$0xff] }
  0xfa   : > { %438 = vrot.lane.b32.xlu1 %v2118_v4, %s2056_s30  ;;  %436 = vrot.lane.b32.xlu0 %v2121_v5, %s2056_s30  ;;  %v702_v21 = vsel %vm545_vm5, %v694_v54, %v2261_v34  ;;  %v714_v39 = vsel %vm554_vm6, %v706_v13, %v2389_v44  ;;  %v713_v48 = vsel %vm554_vm6, %v705_v55, %v2391_v45 }
  0xfb   : > { %v722_v46 = vsel %vm563_vm7, %v714_v39, %v2487_v51  ;;  %v721_v34 = vsel %vm563_vm7, %v713_v48, %v2489_v60  ;;  %v3773_v60 = vld [vmem:[#allocation7_spill] sm:$0xff]  ;;  %v703_v59 = vsel %vm545_vm5, %v695_v50, %v3777_v23  ;;  %v723_v41 = vsel %vm572_vm8, %v715_v10, %v2527_v14 }
  0xfc   : > { %v2599_v9 = vpop.permute.xlu1 %318  ;;  %v2601_v11 = vpop.permute.xlu0 %316 }
  0xfd   : > { %v2610_v26 = vsel %vm554_vm6, %v2465_v36, %v2599_v9  ;;  %v2615_v27 = vsel %vm554_vm6, %v2469_v62, %v2601_v11  ;;  %v701_v36 = vsel %vm545_vm5, %v693_v12, %v2263_v35  ;;  %v3770_v62 = vld [vmem:[#allocation2_spill] sm:$0xff] }
  0xfe   : > { %442 = vrot.lane.b32.xlu1 %v2126_v6, %s2056_s30  ;;  %440 = vrot.lane.b32.xlu0 %v2129_v7, %s2056_s30  ;;  %v696_v49 = vsel %vm536_vm4, %v688_v32, %v3770_v62  ;;  %v709_v42 = vsel %vm554_vm6, %v701_v36, %v3773_v60  ;;  %v3779_v32 = vld [vmem:[#allocation19_spill] sm:$0xff] }
  0xff   : > { %v704_v22 = vsel %vm545_vm5, %v696_v49, %v3776_v58 }
 0x100   : > { %v323_v47 = vpop.permute.xlu1 %322  ;;  %v321_v35 = vpop.permute.xlu0 %320 }
 0x101   : > { %v2643_v44 = vsel %vm554_vm6, %v2497_v29, %v323_v47  ;;  %v2646_v45 = vsel %vm572_vm8, %v722_v46, %v323_v47  ;;  %v2650_v15 = vsel %vm554_vm6, %v2501_v40, %v321_v35  ;;  %v2653_v16 = vsel %vm572_vm8, %v721_v34, %v321_v35  ;;  %v3772_v29 = vld [vmem:[#allocation6_spill] sm:$0xff] }
 0x102   : > { %454 = vrot.lane.b32.xlu1 %v2113_v3, %s2057_s3  ;;  %452 = vrot.lane.b32.xlu0 %v2105_v1, %s2057_s3  ;;  %v710_v51 = vsel %vm554_vm6, %v702_v21, %v3772_v29  ;;  %v3774_v40 = vld [vmem:[#allocation10_spill] sm:$0xff]  ;;  %v3781_v21 = vld [vmem:[#allocation9_spill] sm:$0xff] }
 0x103   : > { %v716_v56 = vsel %vm563_vm7, %v708_v38, %v3774_v40  ;;  %v3780_v38 = vld [vmem:[#allocation8_spill] sm:$0xff]  ;;  %v711_v36 = vsel %vm554_vm6, %v703_v59, %v3781_v21  ;;  %v3783_v29 = vld [vmem:[#allocation21_spill] sm:$0xff] }
 0x104   : > { %v724_v61 = vsel %vm572_vm8, %v716_v56, %v2525_v63  ;;  %v335_v24 = vpop.permute.xlu1 %334  ;;  %v333_v25 = vpop.permute.xlu0 %332  ;;  %v712_v20 = vsel %vm554_vm6, %v704_v22, %v3780_v38 }
 0x105   : > { %v565_v30 = vsel %vm563_vm7, %v2536_v17, %v335_v24  ;;  %v732_v31 = vsel %vm581_vm9, %v724_v61, %v335_v24  ;;  %v564_v54 = vsel %vm563_vm7, %v2541_v28, %v333_v25  ;;  %v731_v12 = vsel %vm581_vm9, %v723_v41, %v333_v25  ;;  %v3778_v17 = vld [vmem:[#allocation18_spill] sm:$0xff] }
 0x106   : > { %458 = vrot.lane.b32.xlu1 %v2110_v2, %s2057_s3  ;;  %456 = vrot.lane.b32.xlu0 %v2102_v0, %s2057_s3  ;;  %v574_v63 = vsel %vm572_vm8, %v565_v30, %v335_v24  ;;  %v740_v14 = vsel %vm590_vm10, %v732_v31, %v335_v24  ;;  %v573_v13 = vsel %vm572_vm8, %v564_v54, %v333_v25 }
 0x107   : > { %v718_v55 = vsel %vm563_vm7, %v710_v51, %v3778_v17  ;;  %v717_v28 = vsel %vm563_vm7, %v709_v42, %v3779_v32  ;;  %v739_v33 = vsel %vm590_vm10, %v731_v12, %v333_v25 }
 0x108   : > { %v726_v39 = vsel %vm572_vm8, %v718_v55, %v2563_v52  ;;  %v725_v48 = vsel %vm572_vm8, %v717_v28, %v2565_v57  ;;  %v339_v62 = vpop.permute.xlu1 %338  ;;  %v337_v49 = vpop.permute.xlu0 %336 }
 0x109   : > { %v567_v37 = vsel %vm563_vm7, %v2573_v18, %v339_v62  ;;  %v734_v50 = vsel %vm581_vm9, %v726_v39, %v339_v62  ;;  %v566_v46 = vsel %vm563_vm7, %v2577_v19, %v337_v49  ;;  %v733_v34 = vsel %vm581_vm9, %v725_v48, %v337_v49  ;;  %v3782_v18 = vld [vmem:[#allocation20_spill] sm:$0xff] }
 0x10a   : > { %462 = vrot.lane.b32.xlu1 %v2118_v4, %s2057_s3  ;;  %460 = vrot.lane.b32.xlu0 %v2121_v5, %s2057_s3  ;;  %v576_v52 = vsel %vm572_vm8, %v567_v37, %v339_v62  ;;  %v742_v57 = vsel %vm590_vm10, %v734_v50, %v339_v62  ;;  %v575_v47 = vsel %vm572_vm8, %v566_v46, %v337_v49 }
 0x10b   : > { %v720_v35 = vsel %vm563_vm7, %v712_v20, %v3782_v18  ;;  %v719_v19 = vsel %vm563_vm7, %v711_v36, %v3783_v29  ;;  %v741_v51 = vsel %vm590_vm10, %v733_v34, %v337_v49 }
 0x10c   : > { %v728_v60 = vsel %vm572_vm8, %v720_v35, %v2599_v9  ;;  %v727_v42 = vsel %vm572_vm8, %v719_v19, %v2601_v11  ;;  %v343_v40 = vpop.permute.xlu1 %342  ;;  %v341_v56 = vpop.permute.xlu0 %340 }
 0x10d   : > { %v569_v8 = vsel %vm563_vm7, %v2610_v26, %v343_v40  ;;  %v736_v10 = vsel %vm581_vm9, %v728_v60, %v343_v40  ;;  %v568_v58 = vsel %vm563_vm7, %v2615_v27, %v341_v56  ;;  %v735_v22 = vsel %vm581_vm9, %v727_v42, %v341_v56 }
 0x10e   : > { %466 = vrot.lane.b32.xlu1 %v2126_v6, %s2057_s3  ;;  %464 = vrot.lane.b32.xlu0 %v2129_v7, %s2057_s3  ;;  %v578_v9 = vsel %vm572_vm8, %v569_v8, %v343_v40  ;;  %v744_v11 = vsel %vm590_vm10, %v736_v10, %v343_v40  ;;  %v577_v23 = vsel %vm572_vm8, %v568_v58, %v341_v56 }
 0x10f   : > { %v743_v26 = vsel %vm590_vm10, %v735_v22, %v341_v56 }
 0x110   : > { %v347_v59 = vpop.permute.xlu1 %346  ;;  %v345_v61 = vpop.permute.xlu0 %344 }
 0x111   : > { %v571_v27 = vsel %vm563_vm7, %v2643_v44, %v347_v59  ;;  %v738_v41 = vsel %vm581_vm9, %v2646_v45, %v347_v59  ;;  %v570_v24 = vsel %vm563_vm7, %v2650_v15, %v345_v61  ;;  %v737_v25 = vsel %vm581_vm9, %v2653_v16, %v345_v61 }
 0x112   : > { %478 = vrot.lane.b32.xlu1 %v2113_v3, %s2058_s4  ;;  %476 = vrot.lane.b32.xlu0 %v2105_v1, %s2058_s4  ;;  %v580_v30 = vsel %vm572_vm8, %v571_v27, %v347_v59  ;;  %v746_v44 = vsel %vm590_vm10, %v738_v41, %v347_v59  ;;  %v579_v45 = vsel %vm572_vm8, %v570_v24, %v345_v61 }
 0x113   : > { %v745_v31 = vsel %vm590_vm10, %v737_v25, %v345_v61 }
 0x114   : > { %v359_v15 = vpop.permute.xlu1 %358  ;;  %v357_v54 = vpop.permute.xlu0 %356 }
 0x115   : > { %v583_v16 = vsel %vm581_vm9, %v574_v63, %v359_v15  ;;  %v2755_v12 = vsel %vm599_vm11, %v740_v14, %v359_v15  ;;  %v582_v3 = vsel %vm581_vm9, %v573_v13, %v357_v54  ;;  %v2759_v1 = vsel %vm599_vm11, %v739_v33, %v357_v54 }
 0x116   : > { %482 = vrot.lane.b32.xlu1 %v2110_v2, %s2058_s4  ;;  %480 = vrot.lane.b32.xlu0 %v2102_v0, %s2058_s4 }
 0x118   : > { %v363_v17 = vpop.permute.xlu1 %362  ;;  %v361_v55 = vpop.permute.xlu0 %360 }
 0x119   : > { %v585_v32 = vsel %vm581_vm9, %v576_v52, %v363_v17  ;;  %v2767_v63 = vsel %vm599_vm11, %v742_v57, %v363_v17  ;;  %v584_v14 = vsel %vm581_vm9, %v575_v47, %v361_v55  ;;  %v2771_v13 = vsel %vm599_vm11, %v741_v51, %v361_v55 }
 0x11a   : > { %486 = vrot.lane.b32.xlu1 %v2118_v4, %s2058_s4  ;;  %484 = vrot.lane.b32.xlu0 %v2121_v5, %s2058_s4 }
 0x11c   : > { %v367_v2 = vpop.permute.xlu1 %366  ;;  %v365_v0 = vpop.permute.xlu0 %364 }
 0x11d   : > { %v587_v28 = vsel %vm581_vm9, %v578_v9, %v367_v2  ;;  %v2779_v33 = vsel %vm599_vm11, %v744_v11, %v367_v2  ;;  %v586_v38 = vsel %vm581_vm9, %v577_v23, %v365_v0  ;;  %v2783_v20 = vsel %vm599_vm11, %v743_v26, %v365_v0 }
 0x11e   : > { %490 = vrot.lane.b32.xlu1 %v2126_v6, %s2058_s4  ;;  %488 = vrot.lane.b32.xlu0 %v2129_v7, %s2058_s4 }
 0x120   : > { %v371_v4 = vpop.permute.xlu1 %370  ;;  %v369_v5 = vpop.permute.xlu0 %368 }
 0x121   : > { %v589_v21 = vsel %vm581_vm9, %v580_v30, %v371_v4  ;;  %v2791_v36 = vsel %vm599_vm11, %v746_v44, %v371_v4  ;;  %v588_v39 = vsel %vm581_vm9, %v579_v45, %v369_v5  ;;  %v2795_v48 = vsel %vm599_vm11, %v745_v31, %v369_v5 }
 0x124   : > { %v383_v62 = vpop.permute.xlu1 %382  ;;  %v381_v49 = vpop.permute.xlu0 %380 }
 0x125   : > { %v592_v37 = vsel %vm590_vm10, %v583_v16, %v383_v62  ;;  %v591_v6 = vsel %vm590_vm10, %v582_v3, %v381_v49 }
 0x128   : > { %v387_v50 = vpop.permute.xlu1 %386  ;;  %v385_v7 = vpop.permute.xlu0 %384 }
 0x129   : > { %v594_v46 = vsel %vm590_vm10, %v585_v32, %v387_v50  ;;  %v593_v34 = vsel %vm590_vm10, %v584_v14, %v385_v7 }
 0x12c   : > { %v2801_v52 = vpop.permute.xlu1 %390  ;;  %v2803_v57 = vpop.permute.xlu0 %388 }
 0x12d   : > { %v596_v47 = vsel %vm590_vm10, %v587_v28, %v2801_v52  ;;  %v595_v18 = vsel %vm590_vm10, %v586_v38, %v2803_v57  ;;  %v756_v28 = vsel %vm608_vm12, %v2755_v12, %v383_v62  ;;  %v755_v38 = vsel %vm608_vm12, %v2759_v1, %v381_v49 }
 0x12e   : > { %v758_v12 = vsel %vm608_vm12, %v2767_v63, %v387_v50  ;;  %v949_v1 = vlaneseq  ;;  %v757_v62 = vsel %vm608_vm12, %v2771_v13, %v385_v7 }
 0x130   : > { %v2809_v35 = vpop.permute.xlu1 %394  ;;  %v2811_v29 = vpop.permute.xlu0 %392  ;;  %v2894_v50 = vshrl.u32 %v949_v1, 7  ;;  %v2027_v1 = vld [vmem:[%s2099_s15] sm:$0xff] }
 0x131   : > { %v598_v19 = vsel %vm590_vm10, %v589_v21, %v2809_v35  ;;  %v597_v51 = vsel %vm590_vm10, %v588_v39, %v2811_v29 }
 0x134   : > { %v407_v60 = vpop.permute.xlu1 %406  ;;  %v405_v42 = vpop.permute.xlu0 %404 }
 0x135   : > { %v601_v40 = vsel %vm599_vm11, %v592_v37, %v407_v60  ;;  %v600_v56 = vsel %vm599_vm11, %v591_v6, %v405_v42  ;;  %v764_v4 = vsel %vm617_vm13, %v756_v28, %v407_v60  ;;  %v763_v5 = vsel %vm617_vm13, %v755_v38, %v405_v42 }
 0x136   : > { %v2060_v42 = vmov 0  }
 0x138   : > { %v411_v8 = vpop.permute.xlu1 %410  ;;  %v409_v10 = vpop.permute.xlu0 %408 }
 0x139   : > { %v603_v58 = vsel %vm599_vm11, %v594_v46, %v411_v8  ;;  %v602_v22 = vsel %vm599_vm11, %v593_v34, %v409_v10  ;;  %v766_v49 = vsel %vm617_vm13, %v758_v12, %v411_v8  ;;  %v760_v8 = vsel %vm608_vm12, %v2779_v33, %v2801_v52 }
 0x13c   : > { %v415_v9 = vpop.permute.xlu1 %414  ;;  %v413_v11 = vpop.permute.xlu0 %412 }
 0x13d   : > { %v2822_v23 = vsel %vm599_vm11, %v596_v47, %v415_v9  ;;  %v2825_v26 = vsel %vm599_vm11, %v595_v18, %v413_v11  ;;  %v2891_v47 = vld [vmem:[%s3727_s0] sm:$0x7]  ;;  %v765_v18 = vsel %vm617_vm13, %v757_v62, %v409_v10  ;;  %v759_v10 = vsel %vm608_vm12, %v2783_v20, %v2803_v57 }
 0x13e   : > { %vm1805_vm15 = vcmp.gt.f32.partialorder %v2891_v47, 0.5  ;;  %v762_v20 = vsel %vm608_vm12, %v2791_v36, %v2809_v35  ;;  %v761_v57 = vsel %vm608_vm12, %v2795_v48, %v2811_v29 }
 0x140   : > { %v2827_v59 = vpop.permute.xlu1 %418  ;;  %v2829_v61 = vpop.permute.xlu0 %416 }
 0x141   : > { %v2833_v27 = vsel %vm599_vm11, %v598_v19, %v2827_v59  ;;  %v2837_v41 = vsel %vm599_vm11, %v597_v51, %v2829_v61 }
 0x144   : > { %v2839_v24 = vpop.permute.xlu1 %781  ;;  %v2841_v25 = vpop.permute.xlu0 %779 }
 0x148   : > { %v2843_v30 = vpop.permute.xlu1 %785  ;;  %v2845_v44 = vpop.permute.xlu0 %783 }
 0x14c   : > { %v2847_v45 = vpop.permute.xlu1 %789  ;;  %v2849_v31 = vpop.permute.xlu0 %787 }
 0x150   : > { %v2851_v15 = vpop.permute.xlu1 %793  ;;  %v2853_v54 = vpop.permute.xlu0 %791 }
 0x154   : > { %v806_v16 = vpop.permute.xlu1 %805  ;;  %v804_v3 = vpop.permute.xlu0 %803 }
 0x158   : > { %v2855_v17 = vpop.permute.xlu1 %809  ;;  %v2857_v55 = vpop.permute.xlu0 %807 }
 0x15c   : > { %v2859_v32 = vpop.permute.xlu1 %813  ;;  %v2861_v14 = vpop.permute.xlu0 %811 }
 0x160   : > { %v2863_v2 = vpop.permute.xlu1 %817  ;;  %v2865_v0 = vpop.permute.xlu0 %815 }
 0x164   : > { %v431_v21 = vpop.permute.xlu1 %430  ;;  %v429_v39 = vpop.permute.xlu0 %428 }
 0x165   : > { %v2874_v37 = vsel %vm608_vm12, %v601_v40, %v431_v21  ;;  %v772_v6 = vsel %vm626_vm14, %v764_v4, %v431_v21  ;;  %v2878_v46 = vsel %vm608_vm12, %v600_v56, %v429_v39  ;;  %v771_v34 = vsel %vm626_vm14, %v763_v5, %v429_v39 }
 0x166   : > { %861 = vrot.lane.b32.xlu1 %v772_v6, %s2059_s5  ;;  %859 = vrot.lane.b32.xlu0 %v771_v34, %s2059_s5  ;;  %v1806_v40 = vsel %vm1805_vm15, 1, %v2060_v42  ;;  %v1809_v56 = vsub.s32 2, %v2894_v50  ;;  %v2026_v34 = vld [vmem:[%s2099_s15 + $0x8] sm:$0xff]  ;;  %v2028_v42 = vld [vmem:[%s2099_s15 + $0x18] sm:$0xff] }
 0x168   : > { %v435_v19 = vpop.permute.xlu1 %434  ;;  %v433_v63 = vpop.permute.xlu0 %432  ;;  %v2912_v4 = vrot.slane %v1806_v40, %v1809_v56  ;;  %v2029_v56 = vld [vmem:[%s2099_s15 + $0x10] sm:$0xff] }
 0x169   : > { %v612_v51 = vsel %vm608_vm12, %v603_v58, %v435_v19  ;;  %v774_v60 = vsel %vm626_vm14, %v766_v49, %v435_v19  ;;  %v611_v13 = vsel %vm608_vm12, %v602_v22, %v433_v63  ;;  %v773_v7 = vsel %vm626_vm14, %v765_v18, %v433_v63  ;;  %v3786_v49 = vld [vmem:[#allocation14_spill] sm:$0xff]  ;;  %v3787_v19 = vld [vmem:[#allocation15_spill] sm:$0xff] }
 0x16a   : > { %865 = vrot.lane.b32.xlu1 %v774_v60, %s2059_s5  ;;  %863 = vrot.lane.b32.xlu0 %v773_v7, %s2059_s5  ;;  %v768_v58 = vsel %vm617_vm13, %v760_v8, %v415_v9  ;;  %v767_v22 = vsel %vm617_vm13, %v759_v10, %v413_v11  ;;  %v828_v9 = vsel %vm500_vm0, %v2839_v24, %v806_v16  ;;  %v3785_v16 = vld [vmem:[#allocation13_spill] sm:$0xff]  ;;  %v2030_v10 = vld [vmem:[%s2099_s15 + $0x28] sm:$0xff] }
 0x16b   : > { %v827_v11 = vsel %vm500_vm0, %v2841_v25, %v804_v3  ;;  %v3784_v25 = vld [vmem:[#allocation12_spill] sm:$0xff] }
 0x16c   : > { %v439_v28 = vpop.permute.xlu1 %438  ;;  %v437_v38 = vpop.permute.xlu0 %436  ;;  %v835_v3 = vsel %vm509_vm1, %v827_v11, %v3785_v16 }
 0x16d   : > { %v614_v5 = vsel %vm608_vm12, %v2822_v23, %v439_v28  ;;  %v776_v21 = vsel %vm626_vm14, %v768_v58, %v439_v28  ;;  %v613_v33 = vsel %vm608_vm12, %v2825_v26, %v437_v38  ;;  %v775_v52 = vsel %vm626_vm14, %v767_v22, %v437_v38  ;;  %v2031_v22 = vld [vmem:[%s2099_s15 + $0x20] sm:$0xff]  ;;  %v3788_v38 = vld [vmem:[#allocation16_spill] sm:$0xff] }
 0x16e   : > { %869 = vrot.lane.b32.xlu1 %v776_v21, %s2059_s5  ;;  %867 = vrot.lane.b32.xlu0 %v775_v52, %s2059_s5  ;;  %v770_v23 = vsel %vm617_vm13, %v762_v20, %v2827_v59  ;;  %v769_v26 = vsel %vm617_vm13, %v761_v57, %v2829_v61  ;;  %v836_v59 = vsel %vm509_vm1, %v828_v9, %v3784_v25  ;;  %v2032_v52 = vld [vmem:[%s2099_s15 + $0x38] sm:$0xff]  ;;  %v2033_v57 = vld [vmem:[%s2099_s15 + $0x30] sm:$0xff] }
 0x16f   : > { %v830_v61 = vsel %vm500_vm0, %v2843_v30, %v2855_v17  ;;  %v844_v12 = vsel %vm518_vm2, %v836_v59, %v2026_v34  ;;  %v843_v62 = vsel %vm518_vm2, %v835_v3, %v2027_v1  ;;  %v831_v17 = vsel %vm500_vm0, %v2849_v31, %v2861_v14 }
 0x170   : > { %v443_v39 = vpop.permute.xlu1 %442  ;;  %v441_v36 = vpop.permute.xlu0 %440  ;;  %v838_v18 = vsel %vm509_vm1, %v830_v61, %v3786_v49  ;;  %v839_v31 = vsel %vm509_vm1, %v831_v17, %v2427_v43  ;;  %v833_v14 = vsel %vm500_vm0, %v2853_v54, %v2865_v0 }
 0x171   : > { %v616_v35 = vsel %vm608_vm12, %v2833_v27, %v443_v39  ;;  %v778_v48 = vsel %vm626_vm14, %v770_v23, %v443_v39  ;;  %v615_v29 = vsel %vm608_vm12, %v2837_v41, %v441_v36  ;;  %v777_v24 = vsel %vm626_vm14, %v769_v26, %v441_v36 }
 0x172   : > { %873 = vrot.lane.b32.xlu1 %v778_v48, %s2059_s5  ;;  %871 = vrot.lane.b32.xlu0 %v777_v24, %s2059_s5  ;;  %v829_v27 = vsel %vm500_vm0, %v2845_v44, %v2857_v55  ;;  %v832_v44 = vsel %vm500_vm0, %v2847_v45, %v2859_v32  ;;  %v846_v40 = vsel %vm518_vm2, %v838_v18, %v2028_v42 }
 0x173   : > { %v837_v30 = vsel %vm509_vm1, %v829_v27, %v3787_v19  ;;  %v840_v45 = vsel %vm509_vm1, %v832_v44, %v2425_v53  ;;  %v834_v32 = vsel %vm500_vm0, %v2851_v15, %v2863_v2  ;;  %v847_v28 = vsel %vm518_vm2, %v839_v31, %v2031_v22  ;;  %v3789_v2 = vld [vmem:[#allocation17_spill] sm:$0xff] }
 0x174   : > { %v455_v41 = vpop.permute.xlu1 %454  ;;  %v453_v6 = vpop.permute.xlu0 %452  ;;  %v845_v8 = vsel %vm518_vm2, %v837_v30, %v2029_v56  ;;  %v848_v58 = vsel %vm518_vm2, %v840_v45, %v2030_v10  ;;  %v842_v15 = vsel %vm509_vm1, %v834_v32, %v3788_v38  ;;  %v841_v54 = vsel %vm509_vm1, %v833_v14, %v3789_v2 }
 0x175   : > { %v850_v20 = vsel %vm518_vm2, %v842_v15, %v2032_v52  ;;  %v849_v9 = vsel %vm518_vm2, %v841_v54, %v2033_v57  ;;  %v619_v11 = vsel %vm617_vm13, %v2874_v37, %v455_v41  ;;  %v618_v23 = vsel %vm617_vm13, %v2878_v46, %v453_v6 }
 0x176   : > { %893 = vrot.lane.b32.xlu1 %v844_v12, %s2061_s8  ;;  %891 = vrot.lane.b32.xlu0 %v843_v62, %s2061_s8  ;;  %vm915_vm0 = vcmask 392192   ;;  %v951_v30 = vsub.s32 0, %v2894_v50  ;;  %vm924_vm1 = vcmask 785408  }
 0x178   : > { %v459_v55 = vpop.permute.xlu1 %458  ;;  %v457_v63 = vpop.permute.xlu0 %456 }
 0x179   : > { %v621_v60 = vsel %vm617_vm13, %v612_v51, %v459_v55  ;;  %v620_v7 = vsel %vm617_vm13, %v611_v13, %v457_v63  ;;  %v963_v55 = vsub.s32 1, %v2894_v50 }
 0x17a   : > { %897 = vrot.lane.b32.xlu1 %v846_v40, %s2061_s8  ;;  %895 = vrot.lane.b32.xlu0 %v845_v8, %s2061_s8 }
 0x17b   : > { %v3040_v56 = vrot.slane %v2891_v47, %v963_v55 }
 0x17c   : > { %v463_v51 = vpop.permute.xlu1 %462  ;;  %v461_v13 = vpop.permute.xlu0 %460 }
 0x17d   : > { %v623_v53 = vsel %vm617_vm13, %v614_v5, %v463_v51  ;;  %v622_v43 = vsel %vm617_vm13, %v613_v33, %v461_v13 }
 0x17e   : > { %901 = vrot.lane.b32.xlu1 %v848_v58, %s2061_s8  ;;  %899 = vrot.lane.b32.xlu0 %v847_v28, %s2061_s8 }
 0x180   : > { %v467_v0 = vpop.permute.xlu1 %466  ;;  %v465_v5 = vpop.permute.xlu0 %464 }
 0x181   : > { %v625_v21 = vsel %vm617_vm13, %v616_v35, %v467_v0  ;;  %v624_v33 = vsel %vm617_vm13, %v615_v29, %v465_v5 }
 0x182   : > { %905 = vrot.lane.b32.xlu1 %v850_v20, %s2061_s8  ;;  %903 = vrot.lane.b32.xlu0 %v849_v9, %s2061_s8 }
 0x184   : > { %v479_v26 = vpop.permute.xlu1 %478  ;;  %v477_v39 = vpop.permute.xlu0 %476 }
 0x185   : > { %v628_v36 = vsel %vm626_vm14, %v619_v11, %v479_v26  ;;  %v627_v35 = vsel %vm626_vm14, %v618_v23, %v477_v39 }
 0x188   : > { %v483_v48 = vpop.permute.xlu1 %482  ;;  %v481_v29 = vpop.permute.xlu0 %480 }
 0x189   : > { %v630_v24 = vsel %vm626_vm14, %v621_v60, %v483_v48  ;;  %v629_v25 = vsel %vm626_vm14, %v620_v7, %v481_v29  ;;  %v3035_v7 = vrot.slane %v2891_v47, %v951_v30 }
 0x18c   : > { %v487_v59 = vpop.permute.xlu1 %486  ;;  %v485_v16 = vpop.permute.xlu0 %484 }
 0x18d   : > { %v632_v3 = vsel %vm626_vm14, %v623_v53, %v487_v59  ;;  %v631_v37 = vsel %vm626_vm14, %v622_v43, %v485_v16 }
 0x190   : > { %v491_v61 = vpop.permute.xlu1 %490  ;;  %v489_v46 = vpop.permute.xlu0 %488 }
 0x191   : > { %v634_v27 = vsel %vm626_vm14, %v625_v21, %v491_v61  ;;  %v633_v41 = vsel %vm626_vm14, %v624_v33, %v489_v46  ;;  %v2062_v61 = vmov 683565275  }
 0x1d8   : > { %v862_v6 = vpop.permute.xlu1 %861  ;;  %v860_v34 = vpop.permute.xlu0 %859 }
 0x1d9   : > { %v917_v42 = vsel %vm915_vm0, %v628_v36, %v862_v6  ;;  %v916_v40 = vsel %vm915_vm0, %v627_v35, %v860_v34  ;;  %v2064_v34 = vmov 2131351028  }
 0x1dc   : > { %v866_v12 = vpop.permute.xlu1 %865  ;;  %v864_v1 = vpop.permute.xlu0 %863 }
 0x1dd   : > { %v919_v53 = vsel %vm915_vm0, %v630_v24, %v866_v12  ;;  %v918_v26 = vsel %vm915_vm0, %v629_v25, %v864_v1  ;;  %v2065_v1 = vmov 2102212464  }
 0x1e0   : > { %v870_v62 = vpop.permute.xlu1 %869  ;;  %v868_v49 = vpop.permute.xlu0 %867 }
 0x1e1   : > { %v3021_v18 = vsel %vm915_vm0, %v632_v3, %v870_v62  ;;  %v3024_v19 = vsel %vm915_vm0, %v631_v37, %v868_v49  ;;  %v2066_v49 = vmov 920167782  }
 0x1e4   : > { %v874_v44 = vpop.permute.xlu1 %873  ;;  %v872_v17 = vpop.permute.xlu0 %871 }
 0x1e5   : > { %v3029_v63 = vsel %vm915_vm0, %v634_v27, %v874_v44  ;;  %v3032_v60 = vsel %vm915_vm0, %v633_v41, %v872_v17  ;;  %v2063_v41 = vmov 2475754826  }
 0x1e8   : > { %v894_v8 = vpop.permute.xlu1 %893  ;;  %v892_v45 = vpop.permute.xlu0 %891 }
 0x1e9   : > { %v3043_v50 = vsel %vm924_vm1, %v917_v42, %v894_v8  ;;  %v3046_v31 = vsel %vm924_vm1, %v916_v40, %v892_v45  ;;  %v2067_v8 = vmov 1326507024  }
 0x1ea   : > { %v954_v32 = vmul.f32 %v3035_v7, %v3043_v50  ;;  %v953_v14 = vmul.f32 %v3035_v7, %v3046_v31 }
 0x1ec   : > { %v3053_v51 = vadd.f32 %v3040_v56, %v954_v32  ;;  %v3056_v47 = vadd.f32 %v3040_v56, %v953_v14  ;;  %v898_v13 = vpop.permute.xlu1 %897  ;;  %v896_v11 = vpop.permute.xlu0 %895 }
 0x1ed   : > { %v3062_v58 = vsel %vm924_vm1, %v919_v53, %v898_v13  ;;  %v3078_v29 = vsel %vm924_vm1, %v918_v26, %v896_v11 }
 0x1ee   : > { %v1077_v43 = vand.u32 2147483647, %v3053_v51  ;;  %v1080_v10 = vand.u32 2139095040, %v3053_v51  ;;  %v973_v22 = vand.u32 2147483647, %v3056_v47  ;;  %v976_v28 = vand.u32 2139095040, %v3056_v47 }
 0x1ef   : > { %v956_v0 = vmul.f32 %v3035_v7, %v3062_v58  ;;  %vm1079_vm15 = vcmp.lt.s32.totalorder %v3053_v51, 0 }
 0x1f0   : > { %v1081_v38 = vshrl.u32 %v1080_v10, 23  ;;  %v1084_v15 = vand.u32 8388607, %v1077_v43  ;;  %v977_v2 = vshrl.u32 %v976_v28, 23  ;;  %v980_v54 = vand.u32 8388607, %v973_v22 }
 0x1f1   : > { %v3073_v33 = vadd.f32 %v3040_v56, %v956_v0 }
 0x1f2   : > { %v1898_v5 = vadd.s32 4294967169, %v1081_v38  ;;  %v1894_v21 = vadd.s32 4294967169, %v977_v2  ;;  %v1085_v20 = vor.u32 8388608, %v1084_v15  ;;  %v981_v57 = vor.u32 8388608, %v980_v54 }
 0x1f3   : > { %v1288_v23 = vand.u32 2139095040, %v3073_v33  ;;  %v1285_v16 = vand.u32 2147483647, %v3073_v33 }
 0x1f4   : > { %v1087_v52 = vadd.s32 1, %v1898_v5  ;;  %v983_v9 = vadd.s32 1, %v1894_v21  ;;  %v3080_v24 = vshll.u32 %v1085_v20, 8  ;;  %v3082_v59 = vshll.u32 %v981_v57, 8 }
 0x1f5   : > { %v3085_v3 = vshrl.u32 %v1288_v23, 23 }
 0x1f6   : > { %vm1088_vm2 = vcmp.gt.s32.totalorder %v1087_v52, 0  ;;  %vm984_vm3 = vcmp.gt.s32.totalorder %v983_v9, 0 }
 0x1f7   : > { %v1089_v39 = vsel %vm1088_vm2, %v1087_v52, 0  ;;  %v985_v48 = vsel %vm984_vm3, %v983_v9, 0 }
 0x1f8   : > { %v1090_v36 = vshrl.u32 %v1089_v39, 5  ;;  %v1091_v35 = vand.u32 31, %v1089_v39  ;;  %v3088_v46 = vshrl.u32 %v985_v48, 5  ;;  %v987_v27 = vand.u32 31, %v985_v48 }
 0x1fa   : > { %v1092_v37 = vsub.s32 32, %v1091_v35  ;;  %v1094_v25 = vshll.u32 %v2062_v61, %v1091_v35  ;;  %v1097_v6 = vshll.u32 %v2063_v41, %v1091_v35  ;;  %v1100_v12 = vshll.u32 %v2064_v34, %v1091_v35 }
 0x1fb   : > { %v1103_v62 = vshll.u32 %v2065_v1, %v1091_v35  ;;  %v1106_v30 = vshll.u32 %v2066_v49, %v1091_v35  ;;  %vm1109_vm4 = vcmp.lt.s32.totalorder %v1090_v36, 1  ;;  %vm1110_vm5 = vcmp.lt.s32.totalorder %v1090_v36, 2 }
 0x1fc   : > { %v1095_v44 = vshrl.u32 %v2063_v41, %v1092_v37  ;;  %v1098_v17 = vshrl.u32 %v2064_v34, %v1092_v37  ;;  %v1101_v55 = vshrl.u32 %v2065_v1, %v1092_v37  ;;  %v1093_v42 = vshrl.u32 %v2062_v61, %v1092_v37 }
 0x1fd   : > { %v1104_v40 = vshrl.u32 %v2066_v49, %v1092_v37  ;;  %v1107_v45 = vshrl.u32 %v2067_v8, %v1092_v37  ;;  %v988_v53 = vsub.s32 32, %v987_v27  ;;  %vm1111_vm6 = vcmp.lt.s32.totalorder %v1090_v36, 3 }
 0x1fe   : > { %v1096_v32 = vor.u32 %v1095_v44, %v1094_v25  ;;  %v1099_v14 = vor.u32 %v1098_v17, %v1097_v6  ;;  %v1102_v13 = vor.u32 %v1101_v55, %v1100_v12  ;;  %vm1112_vm7 = vcmp.lt.s32.totalorder %v1090_v36, 4 }
 0x1ff   : > { %v1105_v10 = vor.u32 %v1104_v40, %v1103_v62  ;;  %v1108_v28 = vor.u32 %v1107_v45, %v1106_v30  ;;  %v990_v52 = vshll.u32 %v2062_v61, %v987_v27  ;;  %v991_v9 = vshrl.u32 %v2063_v41, %v988_v53 }
 0x200   : > { %v1113_v38 = vsel %vm1109_vm4, %v1093_v42, %v1096_v32  ;;  %v1114_v15 = vsel %vm1112_vm7, %v1102_v13, 2102212464  ;;  %v1117_v2 = vsel %vm1109_vm4, %v1096_v32, %v1099_v14  ;;  %v1121_v54 = vsel %vm1109_vm4, %v1099_v14, %v1102_v13 }
 0x201   : > { %v1115_v0 = vsel %vm1111_vm6, %v1099_v14, %v1114_v15  ;;  %v1118_v5 = vsel %vm1112_vm7, %v1105_v10, 920167782  ;;  %v1122_v21 = vsel %vm1112_vm7, %v1108_v28, 1326507024  ;;  %v993_v11 = vshll.u32 %v2063_v41, %v987_v27 }
 0x202   : > { %v1119_v20 = vsel %vm1111_vm6, %v1102_v13, %v1118_v5  ;;  %v1123_v57 = vsel %vm1111_vm6, %v1105_v10, %v1122_v21  ;;  %v1116_v23 = vsel %vm1110_vm5, %v1113_v38, %v1115_v0  ;;  %v994_v35 = vshrl.u32 %v2064_v34, %v988_v53 }
 0x203   : > { %v1120_v26 = vsel %vm1110_vm5, %v1117_v2, %v1119_v20  ;;  %v1124_v39 = vsel %vm1110_vm5, %v1121_v54, %v1123_v57  ;;  %v992_v12 = vor.u32 %v991_v9, %v990_v52  ;;  %v996_v30 = vshll.u32 %v2064_v34, %v987_v27 }
 0x204   : > { %v3111_v48 = vmul.u32.u64.low %v3080_v24, %v1124_v39  ;;  %v3112_v37 = vmul.u32.u64.high %v3080_v24, %v1124_v39, %v3111_v48  ;;  %v3115_v25 = vmul.u32.u64.low %v3080_v24, %v1120_v26  ;;  %v3116_v6 = vmul.u32.u64.high %v3080_v24, %v1120_v26, %v3115_v25 }
 0x205   : > { %v995_v62 = vor.u32 %v994_v35, %v993_v11  ;;  %v997_v44 = vshrl.u32 %v2065_v1, %v988_v53  ;;  %v989_v36 = vshrl.u32 %v2062_v61, %v988_v53  ;;  %v999_v17 = vshll.u32 %v2065_v1, %v987_v27 }
 0x206   : > { %v1000_v55 = vshrl.u32 %v2066_v49, %v988_v53  ;;  %v1003_v42 = vshrl.u32 %v2067_v8, %v988_v53  ;;  %v1132_v40 = vmul.u32 %v3080_v24, %v1116_v23  ;;  %v1002_v32 = vshll.u32 %v2066_v49, %v987_v27 }
 0x207   : > { %v998_v45 = vor.u32 %v997_v44, %v996_v30  ;;  %vm1005_vm8 = vcmp.lt.s32.totalorder %v3088_v46, 1  ;;  %vm1134_vm9 = vc.u32 %v3112_v37, %v3115_v25  ;;  %v1135_v14 = vadd.s32 1, %v3116_v6 }
 0x208   : > { %v1001_v13 = vor.u32 %v1000_v55, %v999_v17  ;;  %vm1006_vm10 = vcmp.lt.s32.totalorder %v3088_v46, 2  ;;  %v1004_v10 = vor.u32 %v1003_v42, %v1002_v32  ;;  %vm1007_vm11 = vcmp.lt.s32.totalorder %v3088_v46, 3 }
 0x209   : > { %vm1008_vm12 = vcmp.lt.s32.totalorder %v3088_v46, 4  ;;  %v1013_v53 = vsel %vm1005_vm8, %v992_v12, %v995_v62  ;;  %v1136_v24 = vsel %vm1134_vm9, %v1135_v14, %v3116_v6  ;;  %v1017_v38 = vsel %vm1005_vm8, %v995_v62, %v998_v45 }
 0x20a   : > { %v1010_v28 = vsel %vm1008_vm12, %v998_v45, 2102212464  ;;  %v1014_v27 = vsel %vm1008_vm12, %v1001_v13, 920167782  ;;  %v1137_v15 = vadd.s32 %v1136_v24, %v1132_v40  ;;  %v1009_v2 = vsel %vm1005_vm8, %v989_v36, %v992_v12 }
 0x20b   : > { %v1015_v54 = vsel %vm1007_vm11, %v998_v45, %v1014_v27  ;;  %v1018_v0 = vsel %vm1008_vm12, %v1004_v10, 1326507024  ;;  %v1011_v5 = vsel %vm1007_vm11, %v995_v62, %v1010_v28  ;;  %v1906_v20 = vadd.s32 4294967169, %v3085_v3 }
 0x20c   : > { %v1016_v21 = vsel %vm1006_vm10, %v1013_v53, %v1015_v54  ;;  %v1019_v52 = vsel %vm1007_vm11, %v1001_v13, %v1018_v0  ;;  %v1138_v57 = vadd.s32 536870912, %v1137_v15  ;;  %v955_v48 = vmul.f32 %v3035_v7, %v3078_v29 }
 0x20d   : > { %v1020_v9 = vsel %vm1006_vm10, %v1017_v38, %v1019_v52  ;;  %v3141_v11 = vmul.u32.u64.low %v3082_v59, %v1016_v21  ;;  %v3142_v23 = vmul.u32.u64.high %v3082_v59, %v1016_v21, %v3141_v11  ;;  %v1295_v35 = vadd.s32 1, %v1906_v20 }
 0x20e   : > { %v3146_v26 = vmul.u32.u64.low %v3082_v59, %v1020_v9  ;;  %v3147_v39 = vmul.u32.u64.high %v3082_v59, %v1020_v9, %v3146_v26  ;;  %v1139_v6 = vshrl.u32 %v1138_v57, 30  ;;  %v1012_v3 = vsel %vm1006_vm10, %v1009_v2, %v1011_v5 }
 0x20f   : > { %v1292_v12 = vand.u32 8388607, %v1285_v16  ;;  %vm1296_vm13 = vcmp.gt.s32.totalorder %v1295_v35, 0  ;;  %v934_v62 = vmul.f32 2.0, %v3043_v50  ;;  %v1031_v44 = vadd.s32 1, %v3142_v23 }
 0x210   : > { %v1140_v30 = vshll.u32 %v1139_v6, 30  ;;  %v1297_v36 = vsel %vm1296_vm13, %v1295_v35, 0  ;;  %v1028_v17 = vmul.u32 %v3082_v59, %v1012_v3  ;;  %vm1030_vm14 = vc.u32 %v3147_v39, %v3141_v11 }
 0x211   : > { %v1299_v55 = vand.u32 31, %v1297_v36  ;;  %v3161_v42 = vadd.f32 %v3040_v56, %v955_v48  ;;  %v1032_v40 = vsel %vm1030_vm14, %v1031_v44, %v3142_v23  ;;  %v1293_v32 = vor.u32 8388608, %v1292_v12 }
 0x212   : > { %v1141_v46 = vsub.s32 %v1137_v15, %v1140_v30  ;;  %v1033_v45 = vadd.s32 %v1032_v40, %v1028_v17  ;;  %v3165_v13 = vmul.f32 2.0, %v3046_v31  ;;  %v3167_v10 = vadd.f32 -1.0, %v934_v62 }
 0x213   : > { %v1300_v14 = vsub.s32 32, %v1299_v55  ;;  %v1163_v59 = vsub.s32 4, %v1139_v6  ;;  %v1184_v24 = vand.u32 2139095040, %v3161_v42  ;;  %v1133_v28 = vadd.s32 %v3115_v25, %v3112_v37 }
 0x214   : > { %v1143_v50 = vsub.s32 0, %v1141_v46  ;;  %v1034_v53 = vadd.s32 536870912, %v1033_v45  ;;  %v1181_v38 = vand.u32 2147483647, %v3161_v42  ;;  %v3176_v2 = vshrl.u32 %v1297_v36, 5 }
 0x215   : > { %v1309_v31 = vshrl.u32 %v2065_v1, %v1300_v14  ;;  %v3179_v54 = vshll.u32 %v1293_v32, 8  ;;  %v1303_v5 = vshrl.u32 %v2063_v41, %v1300_v14  ;;  %v1306_v21 = vshrl.u32 %v2064_v34, %v1300_v14 }
 0x216   : > { %v1899_v27 = vmin.u32 %v1143_v50, %v1141_v46  ;;  %v3174_v15 = vshrl.u32 %v1034_v53, 30  ;;  %v1312_v52 = vshrl.u32 %v2066_v49, %v1300_v14  ;;  %v3186_v37 = vsel %vm1079_vm15, %v1163_v59, %v1139_v6 }
 0x217   : > { %v1308_v20 = vshll.u32 %v2064_v34, %v1299_v55  ;;  %v1185_v57 = vshrl.u32 %v1184_v24, 23  ;;  %v1302_v23 = vshll.u32 %v2062_v61, %v1299_v55  ;;  %v1305_v26 = vshll.u32 %v2063_v41, %v1299_v55 }
 0x218   : > { %v1145_v0 = vclz %v1899_v27  ;;  %v1036_v25 = vshll.u32 %v3174_v15, 30  ;;  %v1311_v35 = vshll.u32 %v2065_v1, %v1299_v55  ;;  %v1301_v3 = vshrl.u32 %v2062_v61, %v1300_v14 }
 0x219   : > { %v1310_v12 = vor.u32 %v1309_v31, %v1308_v20  ;;  %v1315_v6 = vshrl.u32 %v2067_v8, %v1300_v14  ;;  %v1304_v62 = vor.u32 %v1303_v5, %v1302_v23  ;;  %v1307_v30 = vor.u32 %v1306_v21, %v1305_v26 }
 0x21a   : > { %v1900_v9 = vadd.s32 4294967294, %v1145_v0  ;;  %v3193_v48 = vsub.s32 %v1033_v45, %v1036_v25  ;;  %v1313_v44 = vor.u32 %v1312_v52, %v1311_v35  ;;  %v1059_v40 = vsub.s32 4, %v3174_v15 }
 0x21b   : > { %v1314_v32 = vshll.u32 %v2066_v49, %v1299_v55  ;;  %vm1317_vm2 = vcmp.lt.s32.totalorder %v3176_v2, 1  ;;  %vm1320_vm3 = vcmp.lt.s32.totalorder %v3176_v2, 4  ;;  %vm3204_vm4 = vcmp.le.f32.partialorder %v1077_v43, 0.7853982 }
 0x21c   : > { %vm1901_vm0 = vcmp.lt.s32.totalorder %v1900_v9, 0  ;;  %v1039_v17 = vsub.s32 0, %v3193_v48  ;;  %vm975_vm5 = vcmp.lt.s32.totalorder %v3056_v47, 0  ;;  %v1322_v55 = vsel %vm1320_vm3, %v1310_v12, 2102212464 }
 0x21d   : > { %v1148_v36 = vsel %vm1901_vm0, 0, %v1900_v9  ;;  %v1316_v24 = vor.u32 %v1315_v6, %v1314_v32  ;;  %v1325_v0 = vsel %vm1317_vm2, %v1304_v62, %v1307_v30  ;;  %v1326_v43 = vsel %vm1320_vm3, %v1313_v44, 920167782 }
 0x21e   : > { %v1149_v50 = vsub.s32 32, %v1148_v36  ;;  %v1153_v59 = vsub.s32 4294967266, %v1148_v36  ;;  %v1150_v14 = vshll.u32 %v1141_v46, %v1148_v36  ;;  %v1895_v53 = vmin.u32 %v1039_v17, %v3193_v48 }
 0x21f   : > { %vm1318_vm6 = vcmp.lt.s32.totalorder %v3176_v2, 2  ;;  %vm1319_vm7 = vcmp.lt.s32.totalorder %v3176_v2, 3  ;;  %v1321_v46 = vsel %vm1317_vm2, %v1301_v3, %v1304_v62  ;;  %v1330_v26 = vsel %vm1320_vm3, %v1316_v24, 1326507024 }
 0x220   : > { %v1151_v27 = vshrl.u32 %v1133_v28, %v1149_v50  ;;  %v1154_v31 = vadd.s32 127, %v1153_v59  ;;  %v1041_v5 = vclz %v1895_v53  ;;  %v1327_v25 = vsel %vm1319_vm7, %v1310_v12, %v1326_v43 }
 0x221   : > { %v1329_v28 = vsel %vm1317_vm2, %v1307_v30, %v1310_v12  ;;  %v1323_v9 = vsel %vm1319_vm7, %v1307_v30, %v1322_v55  ;;  %v1328_v23 = vsel %vm1318_vm6, %v1325_v0, %v1327_v25  ;;  %vm3228_vm8 = vcmp.le.f32.partialorder %v973_v22, 0.7853982 }
 0x222   : > { %v1152_v21 = vor.u32 %v1151_v27, %v1150_v14  ;;  %v1155_v52 = vshll.u32 %v1154_v31, 23  ;;  %v1896_v20 = vadd.s32 4294967294, %v1041_v5  ;;  %v1331_v62 = vsel %vm1319_vm7, %v1313_v44, %v1330_v26 }
 0x223   : > { %v1902_v36 = vadd.s32 4294967169, %v1185_v57  ;;  %v1332_v12 = vsel %vm1318_vm6, %v1329_v28, %v1331_v62  ;;  %v3235_v30 = vmul.u32.u64.low %v3179_v54, %v1328_v23  ;;  %v3236_v17 = vmul.u32.u64.high %v3179_v54, %v1328_v23, %v3235_v30  ;;  %v902_v28 = vpop.permute.xlu1 %901 }
 0x224   : > { %v1156_v35 = vor.u32 4788187, %v1155_v52  ;;  %v1159_v6 = vcvt.s32.f32 %v1152_v21  ;;  %vm1897_vm9 = vcmp.lt.s32.totalorder %v1896_v20, 0  ;;  %v1029_v22 = vadd.s32 %v3141_v11, %v3147_v39 }
 0x225   : > { %v1044_v50 = vsel %vm1897_vm9, 0, %v1896_v20  ;;  %v3240_v59 = vmul.u32.u64.low %v3179_v54, %v1332_v12  ;;  %v3241_v14 = vmul.u32.u64.high %v3179_v54, %v1332_v12, %v3240_v59  ;;  %v1324_v53 = vsel %vm1318_vm6, %v1321_v46, %v1323_v9 }
 0x226   : > { %v1157_v32 = vand.u32 2147483647, %v1156_v35  ;;  %v1045_v44 = vsub.s32 32, %v1044_v50  ;;  %v1049_v57 = vsub.s32 4294967266, %v1044_v50  ;;  %v1166_v55 = vsel %vm3204_vm4, 0, %v3186_v37 }
 0x227   : > { %v1060_v27 = vsel %vm975_vm5, %v1059_v40, %v3174_v15  ;;  %v1191_v31 = vadd.s32 1, %v1902_v36  ;;  %v1046_v0 = vshll.u32 %v3193_v48, %v1044_v50  ;;  %v1343_v11 = vadd.s32 1, %v3236_v17 }
 0x228   : > { %v1160_v24 = vmul.f32 %v1159_v6, %v1157_v32  ;;  %v1047_v43 = vshrl.u32 %v1029_v22, %v1045_v44  ;;  %v1050_v5 = vadd.s32 127, %v1049_v57  ;;  %v1340_v2 = vmul.u32 %v3179_v54, %v1324_v53 }
 0x229   : > { %vm1342_vm10 = vc.u32 %v3241_v14, %v3235_v30  ;;  %vm1192_vm11 = vcmp.gt.s32.totalorder %v1191_v31, 0  ;;  %v1170_v48 = vadd.s32 3, %v1166_v55  ;;  %v3265_v20 = vadd.f32 -1.0, %v3165_v13 }
 0x22a   : > { %v1161_v39 = vxor.u32 2147483648, %v1160_v24  ;;  %v1048_v46 = vor.u32 %v1047_v43, %v1046_v0  ;;  %v1051_v37 = vshll.u32 %v1050_v5, 23  ;;  %v1344_v21 = vsel %vm1342_vm10, %v1343_v11, %v3236_v17 }
 0x22b   : > { %v1193_v52 = vsel %vm1192_vm11, %v1191_v31, 0  ;;  %v1345_v40 = vadd.s32 %v1344_v21, %v1340_v2  ;;  %v1062_v23 = vsel %vm3228_vm8, 0, %v1060_v27  ;;  %v1188_v35 = vand.u32 8388607, %v1181_v38 }
 0x22c   : > { %v1162_v15 = vsel %vm1079_vm15, %v1161_v39, %v1160_v24  ;;  %v1195_v25 = vand.u32 31, %v1193_v52  ;;  %v1052_v9 = vor.u32 4788187, %v1051_v37  ;;  %v1055_v36 = vcvt.s32.f32 %v1048_v46 }
 0x22d   : > { %v1165_v54 = vsel %vm3204_vm4, %v3053_v51, %v1162_v15  ;;  %v1346_v26 = vadd.s32 536870912, %v1345_v40  ;;  %v3273_v45 = vsel %vm924_vm1, %v3021_v18, %v902_v28  ;;  %v3275_v12 = vand.u32 3, %v1170_v48 }
 0x22e   : > { %1994 = vcosq.f32 %v1165_v54  ;;  %v1196_v6 = vsub.s32 32, %v1195_v25  ;;  %v1053_v62 = vand.u32 2147483647, %v1052_v9  ;;  %v1066_v13 = vadd.s32 3, %v1062_v23 }
 0x22f   : > { %1996 = vsinq.f32 %v1165_v54  ;;  %v3277_v17 = vshrl.u32 %v1346_v26, 30  ;;  %v1189_v53 = vor.u32 8388608, %v1188_v35  ;;  %v3284_v24 = vshrl.u32 %v1193_v52, 5 }
 0x230   : > { %v1199_v32 = vshrl.u32 %v2063_v41, %v1196_v6  ;;  %v1056_v50 = vmul.f32 %v1055_v36, %v1053_v62  ;;  %v1202_v59 = vshrl.u32 %v2064_v34, %v1196_v6  ;;  %v1205_v22 = vshrl.u32 %v2065_v1, %v1196_v6 }
 0x231   : > { %v1208_v44 = vshrl.u32 %v2066_v49, %v1196_v6  ;;  %v1348_v57 = vshll.u32 %v3277_v17, 30  ;;  %v1198_v18 = vshll.u32 %v2062_v61, %v1195_v25  ;;  %v1201_v27 = vshll.u32 %v2063_v41, %v1195_v25 }
 0x232   : > { %v1057_v55 = vxor.u32 2147483648, %v1056_v50  ;;  %v1204_v31 = vshll.u32 %v2064_v34, %v1195_v25  ;;  %v1207_v0 = vshll.u32 %v2065_v1, %v1195_v25  ;;  %v1210_v11 = vshll.u32 %v2066_v49, %v1195_v25 }
 0x233   : > { %v3290_v43 = vsub.s32 %v1345_v40, %v1348_v57  ;;  %v1200_v5 = vor.u32 %v1199_v32, %v1198_v18  ;;  %v1211_v39 = vshrl.u32 %v2067_v8, %v1196_v6  ;;  %vm1176_vm12 = vcmp.eq.s32.totalorder %v3275_v12, 2 }
 0x234   : > { %v1058_v2 = vsel %vm975_vm5, %v1057_v55, %v1056_v50  ;;  %v1203_v46 = vor.u32 %v1202_v59, %v1201_v27  ;;  %v1206_v37 = vor.u32 %v1205_v22, %v1204_v31  ;;  %v1209_v21 = vor.u32 %v1208_v44, %v1207_v0 }
 0x235   : > { %vm1173_vm13 = vcmp.eq.s32.totalorder %v3275_v12, 0  ;;  %v1061_v52 = vsel %vm3228_vm8, %v3056_v47, %v1058_v2  ;;  %v3301_v15 = vand.u32 3, %v1066_v13  ;;  %v1351_v48 = vsub.s32 0, %v3290_v43 }
 0x236   : > { %v1212_v40 = vor.u32 %v1211_v39, %v1210_v11  ;;  %vm1811_vm14 = vcmp.eq.s32.totalorder %v2912_v4, 1  ;;  %vm1172_vm15 = vcmp.lt.s32.totalorder %v3275_v12, 2  ;;  %1998 = vcosq.f32 %v1061_v52 }
 0x237   : > { %v1197_v25 = vshrl.u32 %v2062_v61, %v1196_v6  ;;  %v3307_v28 = vshll.u32 %v1189_v53, 8  ;;  %v958_v54 = vmul.f32 %v3035_v7, %v3273_v45  ;;  %vm1820_vm0 = vcmask 883712  }
 0x238   : > { %vm1169_vm2 = vweird.f32 %v3053_v51  ;;  %2000 = vsinq.f32 %v1061_v52  ;;  %v1907_v3 = vmin.u32 %v1351_v48, %v3290_v43  ;;  %vm1213_vm3 = vcmp.lt.s32.totalorder %v3284_v24, 1 }
 0x239   : > { %vm1216_vm4 = vcmp.lt.s32.totalorder %v3284_v24, 4  ;;  %v1221_v9 = vsel %vm1213_vm3, %v1200_v5, %v1203_v46  ;;  %v1225_v26 = vsel %vm1213_vm3, %v1203_v46, %v1206_v37  ;;  %vm1287_vm5 = vcmp.lt.s32.totalorder %v3073_v33, 0 }
 0x23a   : > { %v1222_v23 = vsel %vm1216_vm4, %v1209_v21, 920167782  ;;  %v1226_v35 = vsel %vm1216_vm4, %v1212_v40, 1326507024  ;;  %v1341_v6 = vadd.s32 %v3235_v30, %v3241_v14  ;;  %v1353_v62 = vclz %v1907_v3 }
 0x23b   : > { %vm1215_vm6 = vcmp.lt.s32.totalorder %v3284_v24, 3  ;;  %v1218_v36 = vsel %vm1216_vm4, %v1206_v37, 2102212464  ;;  %v1995_v13 = vpop.eup %1994  ;;  %vm1214_vm7 = vcmp.lt.s32.totalorder %v3284_v24, 2  ;;  %v1217_v32 = vsel %vm1213_vm3, %v1197_v25, %v1200_v5 }
 0x23c   : > { %v1223_v50 = vsel %vm1215_vm6, %v1206_v37, %v1222_v23  ;;  %v1227_v59 = vsel %vm1215_vm6, %v1209_v21, %v1226_v35  ;;  %v1997_v22 = vpop.eup %1996  ;;  %v1177_v44 = vxor.u32 2147483648, %v1995_v13  ;;  %v1908_v57 = vadd.s32 4294967294, %v1353_v62 }
 0x23d   : > { %v1224_v53 = vsel %vm1214_vm7, %v1221_v9, %v1223_v50  ;;  %v1228_v30 = vsel %vm1214_vm7, %v1225_v26, %v1227_v59  ;;  %v1174_v14 = vxor.u32 2147483648, %v1997_v22  ;;  %v1219_v18 = vsel %vm1215_vm6, %v1203_v46, %v1218_v36 }
 0x23e   : > { %v3325_v55 = vmul.u32.u64.low %v3307_v28, %v1228_v30  ;;  %v3326_v27 = vmul.u32.u64.high %v3307_v28, %v1228_v30, %v3325_v55  ;;  %v1178_v31 = vsel %vm1176_vm12, %v1177_v44, %v1997_v22  ;;  %vm1909_vm8 = vcmp.lt.s32.totalorder %v1908_v57, 0 }
 0x23f   : > { %v3331_v0 = vmul.u32.u64.low %v3307_v28, %v1224_v53  ;;  %v3332_v5 = vmul.u32.u64.high %v3307_v28, %v1224_v53, %v3331_v0  ;;  %v1175_v11 = vsel %vm1173_vm13, %v1995_v13, %v1174_v14  ;;  %v1356_v39 = vsel %vm1909_vm8, 0, %v1908_v57 }
 0x240   : > { %v1371_v2 = vsub.s32 4, %v3277_v17  ;;  %v3339_v46 = vadd.f32 %v3040_v56, %v958_v54  ;;  %v1179_v37 = vsel %vm1172_vm15, %v1175_v11, %v1178_v31  ;;  %v1357_v21 = vsub.s32 32, %v1356_v39 }
 0x241   : > { %v1361_v52 = vsub.s32 4294967266, %v1356_v39  ;;  %v1220_v48 = vsel %vm1214_vm7, %v1217_v32, %v1219_v18  ;;  %v1180_v40 = vsel %vm1169_vm2, nan, %v1179_v37  ;;  %vm3356_vm9 = vcmp.le.f32.partialorder %v1285_v16, 0.7853982 }
 0x242   : > { %v1358_v54 = vshll.u32 %v3290_v43, %v1356_v39  ;;  %vm1238_vm10 = vc.u32 %v3326_v27, %v3331_v0  ;;  %v1813_v12 = vsel %vm1811_vm14, %v3167_v10, %v1180_v40  ;;  %v1359_v24 = vshrl.u32 %v1341_v6, %v1357_v21 }
 0x243   : > { %v1362_v3 = vadd.s32 127, %v1361_v52  ;;  %v1239_v51 = vadd.s32 1, %v3332_v5  ;;  %1822 = vst.msk [vmem:[%s3346_s14 + $0x8] sm:$0xff] %vm1820_vm0, %v1813_v12  ;;  %v1372_v16 = vsel %vm1287_vm5, %v1371_v2, %v3277_v17  ;;  %v1236_v9 = vmul.u32 %v3307_v28, %v1220_v48  ;;  %v1999_v26 = vpop.eup %1998  ;;  %v900_v17 = vpop.permute.xlu0 %899 }
 0x244   : > { %v1493_v43 = vand.u32 2147483647, %v3339_v46  ;;  %v1496_v23 = vand.u32 2139095040, %v3339_v46  ;;  %vm1068_vm11 = vcmp.lt.s32.totalorder %v3301_v15, 2  ;;  %v1360_v10 = vor.u32 %v1359_v24, %v1358_v54 }
 0x245   : > { %v1363_v35 = vshll.u32 %v1362_v3, 23  ;;  %v1240_v6 = vsel %vm1238_vm10, %v1239_v51, %v3332_v5  ;;  %v2001_v62 = vpop.eup %2000  ;;  %vm1069_vm12 = vcmp.eq.s32.totalorder %v3301_v15, 0  ;;  %v1073_v36 = vxor.u32 2147483648, %v1999_v26 }
 0x246   : > { %v1241_v13 = vadd.s32 %v1240_v6, %v1236_v9  ;;  %v1497_v32 = vshrl.u32 %v1496_v23, 23  ;;  %v1070_v50 = vxor.u32 2147483648, %v2001_v62  ;;  %vm1072_vm13 = vcmp.eq.s32.totalorder %v3301_v15, 2 }
 0x247   : > { %v1364_v28 = vor.u32 4788187, %v1363_v35  ;;  %v1374_v59 = vsel %vm3356_vm9, 0, %v1372_v16  ;;  %v1074_v22 = vsel %vm1072_vm13, %v1073_v36, %v2001_v62  ;;  %v1500_v53 = vand.u32 8388607, %v1493_v43 }
 0x248   : > { %v1242_v44 = vadd.s32 536870912, %v1241_v13  ;;  %v1914_v57 = vadd.s32 4294967169, %v1497_v32  ;;  %v1071_v30 = vsel %vm1069_vm12, %v1999_v26, %v1070_v50  ;;  %v1367_v18 = vcvt.s32.f32 %v1360_v10 }
 0x249   : > { %v1365_v14 = vand.u32 2147483647, %v1364_v28  ;;  %v3385_v55 = vsel %vm924_vm1, %v3024_v19, %v900_v17  ;;  %vm1065_vm15 = vweird.f32 %v3056_v47  ;;  %v1075_v31 = vsel %vm1068_vm11, %v1071_v30, %v1074_v22 }
 0x24a   : > { %v3390_v5 = vshrl.u32 %v1242_v44, 30  ;;  %v1503_v11 = vadd.s32 1, %v1914_v57  ;;  %v1076_v39 = vsel %vm1065_vm15, nan, %v1075_v31  ;;  %v936_v2 = vmul.f32 2.0, %v3062_v58 }
 0x24b   : > { %v1368_v37 = vmul.f32 %v1367_v18, %v1365_v14  ;;  %v1378_v21 = vadd.s32 3, %v1374_v59  ;;  %v1812_v52 = vsel %vm1811_vm14, %v3265_v20, %v1076_v39  ;;  %v957_v47 = vmul.f32 %v3035_v7, %v3385_v55 }
 0x24c   : > { %v1244_v19 = vshll.u32 %v3390_v5, 30  ;;  %vm1504_vm2 = vcmp.gt.s32.totalorder %v1503_v11, 0  ;;  %1821 = vst.msk [vmem:[%s3346_s14] sm:$0xff] %vm1820_vm0, %v1812_v52  ;;  %v1501_v48 = vor.u32 8388608, %v1500_v53  ;;  %v3403_v12 = vadd.f32 -1.0, %v936_v2 }
 0x24d   : > { %v1369_v15 = vxor.u32 2147483648, %v1368_v37  ;;  %v1505_v40 = vsel %vm1504_vm2, %v1503_v11, 0  ;;  %v3407_v20 = vand.u32 3, %v1378_v21  ;;  %v3414_v9 = vadd.f32 %v3040_v56, %v957_v47 }
 0x24e   : > { %v3401_v54 = vsub.s32 %v1241_v13, %v1244_v19  ;;  %v1507_v58 = vand.u32 31, %v1505_v40  ;;  %v1237_v23 = vadd.s32 %v3331_v0, %v3326_v27  ;;  %v1506_v26 = vshrl.u32 %v1505_v40, 5 }
 0x24f   : > { %v1370_v24 = vsel %vm1287_vm5, %v1369_v15, %v1368_v37  ;;  %v3418_v10 = vshll.u32 %v1501_v48, 8  ;;  %v1267_v27 = vsub.s32 4, %v3390_v5  ;;  %v1392_v50 = vand.u32 2139095040, %v3414_v9 }
 0x250   : > { %v1373_v3 = vsel %vm3356_vm9, %v3073_v33, %v1370_v24  ;;  %v1247_v51 = vsub.s32 0, %v3401_v54  ;;  %v1508_v16 = vsub.s32 32, %v1507_v58  ;;  %v1510_v6 = vshll.u32 %v2062_v61, %v1507_v58 }
 0x251   : > { %2002 = vcosq.f32 %v1373_v3  ;;  %v1513_v25 = vshll.u32 %v2063_v41, %v1507_v58  ;;  %v1516_v13 = vshll.u32 %v2064_v34, %v1507_v58  ;;  %v1519_v0 = vshll.u32 %v2065_v1, %v1507_v58 }
 0x252   : > { %2004 = vsinq.f32 %v1373_v3  ;;  %v1903_v35 = vmin.u32 %v1247_v51, %v3401_v54  ;;  %v1511_v62 = vshrl.u32 %v2063_v41, %v1508_v16  ;;  %v1514_v36 = vshrl.u32 %v2064_v34, %v1508_v16 }
 0x253   : > { %v1517_v32 = vshrl.u32 %v2065_v1, %v1508_v16  ;;  %v1520_v44 = vshrl.u32 %v2066_v49, %v1508_v16  ;;  %v1509_v53 = vshrl.u32 %v2062_v61, %v1508_v16  ;;  %v1522_v30 = vshll.u32 %v2066_v49, %v1507_v58 }
 0x254   : > { %v1249_v17 = vclz %v1903_v35  ;;  %v1512_v28 = vor.u32 %v1511_v62, %v1510_v6  ;;  %v1515_v59 = vor.u32 %v1514_v36, %v1513_v25  ;;  %v1523_v14 = vshrl.u32 %v2067_v8, %v1508_v16 }
 0x255   : > { %v1518_v22 = vor.u32 %v1517_v32, %v1516_v13  ;;  %vm1183_vm3 = vcmp.lt.s32.totalorder %v3161_v42, 0  ;;  %v1521_v18 = vor.u32 %v1520_v44, %v1519_v0  ;;  %vm1525_vm4 = vcmp.lt.s32.totalorder %v1506_v26, 1 }
 0x256   : > { %v1904_v57 = vadd.s32 4294967294, %v1249_v17  ;;  %vm1527_vm5 = vcmp.lt.s32.totalorder %v1506_v26, 3  ;;  %vm1528_vm6 = vcmp.lt.s32.totalorder %v1506_v26, 4  ;;  %v1524_v31 = vor.u32 %v1523_v14, %v1522_v30 }
 0x257   : > { %v1529_v11 = vsel %vm1525_vm4, %v1509_v53, %v1512_v28  ;;  %v1530_v39 = vsel %vm1528_vm6, %v1518_v22, 2102212464  ;;  %v1533_v21 = vsel %vm1525_vm4, %v1512_v28, %v1515_v59  ;;  %v1534_v52 = vsel %vm1528_vm6, %v1521_v18, 920167782 }
 0x258   : > { %vm1905_vm7 = vcmp.lt.s32.totalorder %v1904_v57, 0  ;;  %v1531_v37 = vsel %vm1527_vm5, %v1515_v59, %v1530_v39  ;;  %vm1380_vm8 = vcmp.lt.s32.totalorder %v3407_v20, 2  ;;  %vm3443_vm9 = vcmp.le.f32.partialorder %v1181_v38, 0.7853982 }
 0x259   : > { %v1252_v2 = vsel %vm1905_vm7, 0, %v1904_v57  ;;  %vm1526_vm10 = vcmp.lt.s32.totalorder %v1506_v26, 2  ;;  %vm1377_vm11 = vweird.f32 %v3073_v33  ;;  %v1535_v58 = vsel %vm1527_vm5, %v1518_v22, %v1534_v52 }
 0x25a   : > { %v1253_v47 = vsub.s32 32, %v1252_v2  ;;  %v1254_v15 = vshll.u32 %v3401_v54, %v1252_v2  ;;  %v1257_v48 = vsub.s32 4294967266, %v1252_v2  ;;  %v1532_v40 = vsel %vm1526_vm10, %v1529_v11, %v1531_v37 }
 0x25b   : > { %v1537_v24 = vsel %vm1525_vm4, %v1515_v59, %v1518_v22  ;;  %v1538_v3 = vsel %vm1528_vm6, %v1524_v31, 1326507024  ;;  %v1536_v38 = vsel %vm1526_vm10, %v1533_v21, %v1535_v58  ;;  %v1393_v62 = vshrl.u32 %v1392_v50, 23 }
 0x25c   : > { %v1255_v51 = vshrl.u32 %v1237_v23, %v1253_v47  ;;  %v1258_v16 = vadd.s32 127, %v1257_v48  ;;  %v1539_v35 = vsel %vm1527_vm5, %v1521_v18, %v1538_v3  ;;  %vm1381_vm12 = vcmp.eq.s32.totalorder %v3407_v20, 0 }
 0x25d   : > { %v1540_v6 = vsel %vm1526_vm10, %v1537_v24, %v1539_v35  ;;  %v3454_v25 = vmul.u32.u64.low %v3418_v10, %v1536_v38  ;;  %v3455_v54 = vmul.u32.u64.high %v3418_v10, %v1536_v38, %v3454_v25  ;;  %vm1384_vm13 = vcmp.eq.s32.totalorder %v3407_v20, 2 }
 0x25e   : > { %v2003_v36 = vpop.eup %2002  ;;  %v1256_v13 = vor.u32 %v1255_v51, %v1254_v15  ;;  %v1259_v32 = vshll.u32 %v1258_v16, 23  ;;  %v3459_v17 = vmul.u32.u64.low %v3418_v10, %v1540_v6  ;;  %v3460_v0 = vmul.u32.u64.high %v3418_v10, %v1540_v6, %v3459_v17 }
 0x25f   : > { %v2005_v28 = vpop.eup %2004  ;;  %v1385_v23 = vxor.u32 2147483648, %v2003_v36  ;;  %v1910_v26 = vadd.s32 4294967169, %v1393_v62  ;;  %v1268_v50 = vsel %vm1183_vm3, %v1267_v27, %v3390_v5  ;;  %v1389_v44 = vand.u32 2147483647, %v3414_v9 }
 0x260   : > { %v1382_v59 = vxor.u32 2147483648, %v2005_v28  ;;  %v1260_v22 = vor.u32 4788187, %v1259_v32  ;;  %v1548_v53 = vmul.u32 %v3418_v10, %v1532_v40  ;;  %v1551_v30 = vadd.s32 1, %v3455_v54  ;;  %v906_v10 = vpop.permute.xlu1 %905 }
 0x261   : > { %v1386_v57 = vsel %vm1384_vm13, %v1385_v23, %v2005_v28  ;;  %v1399_v14 = vadd.s32 1, %v1910_v26  ;;  %v1263_v11 = vcvt.s32.f32 %v1256_v13  ;;  %vm1550_vm15 = vc.u32 %v3460_v0, %v3454_v25 }
 0x262   : > { %v1383_v18 = vsel %vm1381_vm12, %v2003_v36, %v1382_v59  ;;  %v1261_v31 = vand.u32 2147483647, %v1260_v22  ;;  %v1270_v5 = vsel %vm3443_vm9, 0, %v1268_v50  ;;  %v1552_v27 = vsel %vm1550_vm15, %v1551_v30, %v3455_v54 }
 0x263   : > { %v1387_v39 = vsel %vm1380_vm8, %v1383_v18, %v1386_v57  ;;  %vm1400_vm2 = vcmp.gt.s32.totalorder %v1399_v14, 0  ;;  %v1553_v21 = vadd.s32 %v1552_v27, %v1548_v53  ;;  %v935_v20 = vmul.f32 2.0, %v3078_v29 }
 0x264   : > { %v1388_v2 = vsel %vm1377_vm11, nan, %v1387_v39  ;;  %v1264_v37 = vmul.f32 %v1263_v11, %v1261_v31  ;;  %v1401_v52 = vsel %vm1400_vm2, %v1399_v14, 0  ;;  %v3487_v58 = vsel %vm924_vm1, %v3029_v63, %v906_v10 }
 0x265   : > { %v1815_v47 = vsel %vm1811_vm14, %v3403_v12, %v1388_v2  ;;  %v1403_v15 = vand.u32 31, %v1401_v52  ;;  %v1554_v40 = vadd.s32 536870912, %v1553_v21  ;;  %v1274_v33 = vadd.s32 3, %v1270_v5 }
 0x266   : > { %1824 = vst.msk [vmem:[%s3346_s14 + $0x18] sm:$0xff] %vm1820_vm0, %v1815_v47  ;;  %v1265_v48 = vxor.u32 2147483648, %v1264_v37  ;;  %v1396_v24 = vand.u32 8388607, %v1389_v44  ;;  %v1402_v3 = vshrl.u32 %v1401_v52, 5  ;;  %v3511_v22 = vadd.f32 -1.0, %v935_v20 }
 0x267   : > { %v1404_v51 = vsub.s32 32, %v1403_v15  ;;  %v3493_v16 = vshrl.u32 %v1554_v40, 30  ;;  %v1406_v38 = vshll.u32 %v2062_v61, %v1403_v15  ;;  %v1409_v29 = vshll.u32 %v2063_v41, %v1403_v15 }
 0x268   : > { %v1266_v12 = vsel %vm1183_vm3, %v1265_v48, %v1264_v37  ;;  %v1412_v54 = vshll.u32 %v2064_v34, %v1403_v15  ;;  %v1415_v13 = vshll.u32 %v2065_v1, %v1403_v15  ;;  %v1418_v19 = vshll.u32 %v2066_v49, %v1403_v15  ;;  %v904_v48 = vpop.permute.xlu0 %903 }
 0x269   : > { %v1269_v63 = vsel %vm3443_vm9, %v3161_v42, %v1266_v12  ;;  %v1407_v35 = vshrl.u32 %v2063_v41, %v1404_v51  ;;  %v1410_v6 = vshrl.u32 %v2064_v34, %v1404_v51  ;;  %v1556_v62 = vshll.u32 %v3493_v16, 30 }
 0x26a   : > { %2006 = vcosq.f32 %v1269_v63  ;;  %v1413_v36 = vshrl.u32 %v2065_v1, %v1404_v51  ;;  %v1416_v17 = vshrl.u32 %v2066_v49, %v1404_v51  ;;  %v1419_v59 = vshrl.u32 %v2067_v8, %v1404_v51 }
 0x26b   : > { %2008 = vsinq.f32 %v1269_v63  ;;  %v1408_v32 = vor.u32 %v1407_v35, %v1406_v38  ;;  %v3508_v28 = vsub.s32 %v1553_v21, %v1556_v62  ;;  %v1411_v23 = vor.u32 %v1410_v6, %v1409_v29 }
 0x26c   : > { %v1414_v26 = vor.u32 %v1413_v36, %v1412_v54  ;;  %v1405_v50 = vshrl.u32 %v2062_v61, %v1404_v51  ;;  %v1417_v57 = vor.u32 %v1416_v17, %v1415_v13  ;;  %v960_v53 = vmul.f32 %v3035_v7, %v3487_v58 }
 0x26d   : > { %v1559_v30 = vsub.s32 0, %v3508_v28  ;;  %v1397_v14 = vor.u32 8388608, %v1396_v24  ;;  %v1420_v18 = vor.u32 %v1419_v59, %v1418_v19  ;;  %vm1421_vm3 = vcmp.lt.s32.totalorder %v1402_v3, 1 }
 0x26e   : > { %v1275_v31 = vand.u32 3, %v1274_v33  ;;  %vm1423_vm4 = vcmp.lt.s32.totalorder %v1402_v3, 3  ;;  %vm1424_vm5 = vcmp.lt.s32.totalorder %v1402_v3, 4  ;;  %v1425_v11 = vsel %vm1421_vm3, %v1405_v50, %v1408_v32 }
 0x26f   : > { %v1915_v39 = vmin.u32 %v1559_v30, %v3508_v28  ;;  %v1426_v5 = vsel %vm1424_vm5, %v1414_v26, 2102212464  ;;  %v1429_v27 = vsel %vm1421_vm3, %v1408_v32, %v1411_v23  ;;  %v1430_v10 = vsel %vm1424_vm5, %v1417_v57, 920167782 }
 0x270   : > { %v1427_v2 = vsel %vm1423_vm4, %v1411_v23, %v1426_v5  ;;  %v1431_v37 = vsel %vm1423_vm4, %v1414_v26, %v1430_v10  ;;  %v1433_v21 = vsel %vm1421_vm3, %v1411_v23, %v1414_v26  ;;  %v1434_v52 = vsel %vm1424_vm5, %v1420_v18, 1326507024 }
 0x271   : > { %v1561_v47 = vclz %v1915_v39  ;;  %vm1422_vm6 = vcmp.lt.s32.totalorder %v1402_v3, 2  ;;  %v1437_v15 = vshll.u32 %v1397_v14, 8  ;;  %v3521_v20 = vadd.f32 %v3040_v56, %v960_v53 }
 0x272   : > { %v1579_v40 = vsub.s32 4, %v3493_v16  ;;  %v1428_v33 = vsel %vm1422_vm6, %v1425_v11, %v1427_v2  ;;  %v1432_v24 = vsel %vm1422_vm6, %v1429_v27, %v1431_v37  ;;  %v1435_v51 = vsel %vm1423_vm4, %v1417_v57, %v1434_v52 }
 0x273   : > { %vm1273_vm7 = vweird.f32 %v3161_v42  ;;  %v1916_v12 = vadd.s32 4294967294, %v1561_v47  ;;  %v1436_v38 = vsel %vm1422_vm6, %v1433_v21, %v1435_v51  ;;  %vm1495_vm8 = vcmp.lt.s32.totalorder %v3339_v46, 0 }
 0x274   : > { %v3526_v29 = vmul.u32.u64.low %v1437_v15, %v1432_v24  ;;  %v3527_v63 = vmul.u32.u64.high %v1437_v15, %v1432_v24, %v3526_v29  ;;  %v3530_v35 = vmul.u32.u64.low %v1437_v15, %v1436_v38  ;;  %v3531_v6 = vmul.u32.u64.high %v1437_v15, %v1436_v38, %v3530_v35 }
 0x275   : > { %v3535_v54 = vsel %vm924_vm1, %v3032_v60, %v904_v48  ;;  %vm1277_vm9 = vcmp.eq.s32.totalorder %v1275_v31, 0  ;;  %vm1280_vm10 = vcmp.eq.s32.totalorder %v1275_v31, 2  ;;  %vm1917_vm11 = vcmp.lt.s32.totalorder %v1916_v12, 0 }
 0x276   : > { %v1704_v3 = vand.u32 2139095040, %v3521_v20  ;;  %v1549_v36 = vadd.s32 %v3454_v25, %v3460_v0  ;;  %v1564_v13 = vsel %vm1917_vm11, 0, %v1916_v12  ;;  %v1580_v32 = vsel %vm1495_vm8, %v1579_v40, %v3493_v16 }
 0x277   : > { %v2007_v62 = vpop.eup %2006  ;;  %v1444_v17 = vmul.u32 %v1437_v15, %v1428_v33  ;;  %v1565_v26 = vsub.s32 32, %v1564_v13  ;;  %v1569_v60 = vsub.s32 4294967266, %v1564_v13  ;;  %v959_v59 = vmul.f32 %v3035_v7, %v3535_v54 }
 0x278   : > { %v2009_v19 = vpop.eup %2008  ;;  %v1281_v23 = vxor.u32 2147483648, %v2007_v62  ;;  %v1566_v57 = vshll.u32 %v3508_v28, %v1564_v13  ;;  %vm1446_vm1 = vc.u32 %v3531_v6, %v3526_v29  ;;  %v1447_v25 = vadd.s32 1, %v3527_v63 }
 0x279   : > { %v1278_v50 = vxor.u32 2147483648, %v2009_v19  ;;  %v1567_v53 = vshrl.u32 %v1549_v36, %v1565_v26  ;;  %v1570_v30 = vadd.s32 127, %v1569_v60  ;;  %v1705_v16 = vshrl.u32 %v1704_v3, 23 }
 0x27a   : > { %v1282_v0 = vsel %vm1280_vm10, %v1281_v23, %v2009_v19  ;;  %vm1276_vm12 = vcmp.lt.s32.totalorder %v1275_v31, 2  ;;  %vm3552_vm13 = vcmp.le.f32.partialorder %v1493_v43, 0.7853982  ;;  %v1448_v28 = vsel %vm1446_vm1, %v1447_v25, %v3527_v63 }
 0x27b   : > { %v1279_v14 = vsel %vm1277_vm9, %v2007_v62, %v1278_v50  ;;  %v1568_v11 = vor.u32 %v1567_v53, %v1566_v57  ;;  %v1571_v39 = vshll.u32 %v1570_v30, 23  ;;  %v1449_v5 = vadd.s32 %v1448_v28, %v1444_v17 }
 0x27c   : > { %v1283_v18 = vsel %vm1276_vm12, %v1279_v14, %v1282_v0  ;;  %v1582_v31 = vsel %vm3552_vm13, 0, %v1580_v32  ;;  %v1701_v10 = vand.u32 2147483647, %v3521_v20  ;;  %v1922_v2 = vadd.s32 4294967169, %v1705_v16 }
 0x27d   : > { %v1284_v27 = vsel %vm1273_vm7, nan, %v1283_v18  ;;  %v1572_v37 = vor.u32 4788187, %v1571_v39  ;;  %v1450_v21 = vadd.s32 536870912, %v1449_v5  ;;  %v3566_v52 = vadd.f32 %v3040_v56, %v959_v59 }
 0x27e   : > { %v1814_v43 = vsel %vm1811_vm14, %v3511_v22, %v1284_v27  ;;  %v1711_v47 = vadd.s32 1, %v1922_v2  ;;  %v938_v42 = vmul.f32 2.0, %v3273_v45  ;;  %v1575_v48 = vcvt.s32.f32 %v1568_v11 }
 0x27f   : > { %1823 = vst.msk [vmem:[%s3346_s14 + $0x10] sm:$0xff] %vm1820_vm0, %v1814_v43  ;;  %v1573_v15 = vand.u32 2147483647, %v1572_v37  ;;  %v3571_v40 = vshrl.u32 %v1450_v21, 30  ;;  %v1586_v33 = vadd.s32 3, %v1582_v31  ;;  %v1600_v56 = vand.u32 2139095040, %v3566_v52 }
 0x280   : > { %v1708_v24 = vand.u32 8388607, %v1701_v10  ;;  %vm1712_vm15 = vcmp.gt.s32.totalorder %v1711_v47, 0  ;;  %v3577_v63 = vadd.f32 -1.0, %v938_v42  ;;  %v1445_v62 = vadd.s32 %v3526_v29, %v3531_v6 }
 0x281   : > { %v1576_v22 = vmul.f32 %v1575_v48, %v1573_v15  ;;  %v1452_v51 = vshll.u32 %v3571_v40, 30  ;;  %v1713_v12 = vsel %vm1712_vm15, %v1711_v47, 0  ;;  %v3579_v3 = vand.u32 3, %v1586_v33 }
 0x282   : > { %v1715_v38 = vand.u32 31, %v1713_v12  ;;  %v1709_v36 = vor.u32 8388608, %v1708_v24  ;;  %v1714_v19 = vshrl.u32 %v1713_v12, 5  ;;  %v1601_v23 = vshrl.u32 %v1600_v56, 23 }
 0x283   : > { %v1577_v35 = vxor.u32 2147483648, %v1576_v22  ;;  %v1453_v45 = vsub.s32 %v1449_v5, %v1452_v51  ;;  %v1597_v53 = vand.u32 2147483647, %v3566_v52  ;;  %vm1585_vm7 = vweird.f32 %v3339_v46 }
 0x284   : > { %v1716_v13 = vsub.s32 32, %v1715_v38  ;;  %v1718_v60 = vshll.u32 %v2062_v61, %v1715_v38  ;;  %v1721_v6 = vshll.u32 %v2063_v41, %v1715_v38  ;;  %v1724_v25 = vshll.u32 %v2064_v34, %v1715_v38 }
 0x285   : > { %v1578_v32 = vsel %vm1495_vm8, %v1577_v35, %v1576_v22  ;;  %v1455_v17 = vsub.s32 0, %v1453_v45  ;;  %v3593_v0 = vshll.u32 %v1709_v36, 8  ;;  %v1727_v7 = vshll.u32 %v2065_v1, %v1715_v38 }
 0x286   : > { %v1581_v26 = vsel %vm3552_vm13, %v3339_v46, %v1578_v32  ;;  %v1719_v59 = vshrl.u32 %v2063_v41, %v1716_v13  ;;  %v1722_v50 = vshrl.u32 %v2064_v34, %v1716_v13  ;;  %v1725_v57 = vshrl.u32 %v2065_v1, %v1716_v13 }
 0x287   : > { %2010 = vcosq.f32 %v1581_v26  ;;  %v1911_v29 = vmin.u32 %v1455_v17, %v1453_v45  ;;  %v1728_v18 = vshrl.u32 %v2066_v49, %v1716_v13  ;;  %v1730_v11 = vshll.u32 %v2066_v49, %v1715_v38 }
 0x288   : > { %2012 = vsinq.f32 %v1581_v26  ;;  %v1720_v16 = vor.u32 %v1719_v59, %v1718_v60  ;;  %v1723_v14 = vor.u32 %v1722_v50, %v1721_v6  ;;  %v1726_v28 = vor.u32 %v1725_v57, %v1724_v25 }
 0x289   : > { %v1457_v30 = vclz %v1911_v29  ;;  %v1731_v39 = vshrl.u32 %v2067_v8, %v1716_v13  ;;  %v1717_v27 = vshrl.u32 %v2062_v61, %v1716_v13  ;;  %vm1733_vm2 = vcmp.lt.s32.totalorder %v1714_v19, 1 }
 0x28a   : > { %v1918_v31 = vadd.s32 4294967169, %v1601_v23  ;;  %v1729_v2 = vor.u32 %v1728_v18, %v1727_v7  ;;  %vm1734_vm3 = vcmp.lt.s32.totalorder %v1714_v19, 2  ;;  %vm1736_vm4 = vcmp.lt.s32.totalorder %v1714_v19, 4 }
 0x28b   : > { %v1912_v5 = vadd.s32 4294967294, %v1457_v30  ;;  %v1732_v43 = vor.u32 %v1731_v39, %v1730_v11  ;;  %vm1735_vm6 = vcmp.lt.s32.totalorder %v1714_v19, 3  ;;  %v1738_v37 = vsel %vm1736_vm4, %v1726_v28, 2102212464 }
 0x28c   : > { %v1741_v21 = vsel %vm1733_vm2, %v1720_v16, %v1723_v14  ;;  %v1742_v42 = vsel %vm1736_vm4, %v1729_v2, 920167782  ;;  %v1745_v15 = vsel %vm1733_vm2, %v1723_v14, %v1726_v28  ;;  %v1737_v22 = vsel %vm1733_vm2, %v1717_v27, %v1720_v16 }
 0x28d   : > { %vm1913_vm5 = vcmp.lt.s32.totalorder %v1912_v5, 0  ;;  %v1746_v48 = vsel %vm1736_vm4, %v1732_v43, 1326507024  ;;  %v1739_v51 = vsel %vm1735_vm6, %v1723_v14, %v1738_v37  ;;  %v1743_v56 = vsel %vm1735_vm6, %v1726_v28, %v1742_v42 }
 0x28e   : > { %v1460_v47 = vsel %vm1913_vm5, 0, %v1912_v5  ;;  %v1747_v38 = vsel %vm1735_vm6, %v1729_v2, %v1746_v48  ;;  %v1607_v35 = vadd.s32 1, %v1918_v31  ;;  %v1744_v32 = vsel %vm1734_vm3, %v1741_v21, %v1743_v56 }
 0x28f   : > { %v1461_v33 = vsub.s32 32, %v1460_v47  ;;  %v1465_v24 = vsub.s32 4294967266, %v1460_v47  ;;  %v1462_v12 = vshll.u32 %v1453_v45, %v1460_v47  ;;  %v1748_v17 = vsel %vm1734_vm3, %v1745_v15, %v1747_v38 }
 0x290   : > { %v3608_v23 = vmul.u32.u64.low %v3593_v0, %v1748_v17  ;;  %v3609_v26 = vmul.u32.u64.high %v3593_v0, %v1748_v17, %v3608_v23  ;;  %v3612_v60 = vmul.u32.u64.low %v3593_v0, %v1744_v32  ;;  %v3613_v59 = vmul.u32.u64.high %v3593_v0, %v1744_v32, %v3612_v60 }
 0x291   : > { %v1463_v36 = vshrl.u32 %v1445_v62, %v1461_v33  ;;  %v1466_v13 = vadd.s32 127, %v1465_v24  ;;  %v1740_v29 = vsel %vm1734_vm3, %v1737_v22, %v1739_v51  ;;  %vm1608_vm8 = vcmp.gt.s32.totalorder %v1607_v35, 0 }
 0x292   : > { %vm1589_vm9 = vcmp.eq.s32.totalorder %v3579_v3, 0  ;;  %vm1391_vm10 = vcmp.lt.s32.totalorder %v3414_v9, 0  ;;  %v3621_v6 = vand.u32 8388607, %v1597_v53  ;;  %v1609_v57 = vsel %vm1608_vm8, %v1607_v35, 0 }
 0x293   : > { %v1464_v45 = vor.u32 %v1463_v36, %v1462_v12  ;;  %v1467_v50 = vshll.u32 %v1466_v13, 23  ;;  %vm1592_vm11 = vcmp.eq.s32.totalorder %v3579_v3, 2  ;;  %vm3626_vm1 = vcmp.le.f32.partialorder %v1389_v44, 0.7853982 }
 0x294   : > { %v2011_v62 = vpop.eup %2010  ;;  %v1475_v14 = vsub.s32 4, %v3571_v40  ;;  %v1756_v28 = vmul.u32 %v3593_v0, %v1740_v29  ;;  %vm1758_vm12 = vc.u32 %v3609_v26, %v3612_v60  ;;  %v1759_v18 = vadd.s32 1, %v3613_v59 }
 0x295   : > { %v2013_v25 = vpop.eup %2012  ;;  %v1593_v30 = vxor.u32 2147483648, %v2011_v62  ;;  %v1468_v16 = vor.u32 4788187, %v1467_v50  ;;  %v1471_v5 = vcvt.s32.f32 %v1464_v45  ;;  %v1611_v27 = vand.u32 31, %v1609_v57 }
 0x296   : > { %v1590_v7 = vxor.u32 2147483648, %v2013_v25  ;;  %vm1588_vm13 = vcmp.lt.s32.totalorder %v3579_v3, 2  ;;  %v1760_v31 = vsel %vm1758_vm12, %v1759_v18, %v3613_v59  ;;  %v1605_v2 = vor.u32 8388608, %v3621_v6 }
 0x297   : > { %v1594_v11 = vsel %vm1592_vm11, %v1593_v30, %v2013_v25  ;;  %v1469_v39 = vand.u32 2147483647, %v1468_v16  ;;  %v1761_v37 = vadd.s32 %v1760_v31, %v1756_v28  ;;  %v1612_v21 = vsub.s32 32, %v1611_v27 }
 0x298   : > { %v1591_v44 = vsel %vm1589_vm9, %v2011_v62, %v1590_v7  ;;  %v1476_v42 = vsel %vm1391_vm10, %v1475_v14, %v3571_v40  ;;  %v1610_v15 = vshrl.u32 %v1609_v57, 5  ;;  %v1614_v3 = vshll.u32 %v2062_v61, %v1611_v27 }
 0x299   : > { %v1595_v0 = vsel %vm1588_vm13, %v1591_v44, %v1594_v11  ;;  %v1472_v43 = vmul.f32 %v1471_v5, %v1469_v39  ;;  %v1762_v24 = vadd.s32 536870912, %v1761_v37  ;;  %v1617_v22 = vshll.u32 %v2063_v41, %v1611_v27 }
 0x29a   : > { %v1596_v47 = vsel %vm1585_vm7, nan, %v1595_v0  ;;  %v1615_v46 = vshrl.u32 %v2063_v41, %v1612_v21  ;;  %v1618_v51 = vshrl.u32 %v2064_v34, %v1612_v21  ;;  %v1620_v12 = vshll.u32 %v2064_v34, %v1611_v27 }
 0x29b   : > { %v1817_v48 = vsel %vm1811_vm14, %v3577_v63, %v1596_v47  ;;  %v1473_v33 = vxor.u32 2147483648, %v1472_v43  ;;  %v1621_v40 = vshrl.u32 %v2065_v1, %v1612_v21  ;;  %v3658_v38 = vshrl.u32 %v1762_v24, 30 }
 0x29c   : > { %1826 = vst.msk [vmem:[%s3346_s14 + $0x28] sm:$0xff] %vm1820_vm0, %v1817_v48  ;;  %v1623_v63 = vshll.u32 %v2065_v1, %v1611_v27  ;;  %v1624_v35 = vshrl.u32 %v2066_v49, %v1612_v21  ;;  %v1478_v41 = vsel %vm3626_vm1, 0, %v1476_v42  ;;  %v1616_v13 = vor.u32 %v1615_v46, %v1614_v3 }
 0x29d   : > { %v1474_v56 = vsel %vm1391_vm10, %v1473_v33, %v1472_v43  ;;  %v1619_v34 = vor.u32 %v1618_v51, %v1617_v22  ;;  %v1764_v32 = vshll.u32 %v3658_v38, 30  ;;  %v1622_v17 = vor.u32 %v1621_v40, %v1620_v12 }
 0x29e   : > { %v1477_v36 = vsel %vm3626_vm1, %v3414_v9, %v1474_v56  ;;  %v1625_v23 = vor.u32 %v1624_v35, %v1623_v63  ;;  %v1626_v59 = vshll.u32 %v2066_v49, %v1611_v27  ;;  %v1627_v1 = vshrl.u32 %v2067_v8, %v1612_v21 }
 0x29f   : > { %2014 = vcosq.f32 %v1477_v36  ;;  %vm1629_vm15 = vcmp.lt.s32.totalorder %v1610_v15, 1  ;;  %v1765_v45 = vsub.s32 %v1761_v37, %v1764_v32  ;;  %vm1632_vm2 = vcmp.lt.s32.totalorder %v1610_v15, 4 }
 0x2a0   : > { %2016 = vsinq.f32 %v1477_v36  ;;  %v1637_v50 = vsel %vm1629_vm15, %v1616_v13, %v1619_v34  ;;  %v1482_v29 = vadd.s32 3, %v1478_v41  ;;  %v1628_v62 = vor.u32 %v1627_v1, %v1626_v59 }
 0x2a1   : > { %vm1631_vm3 = vcmp.lt.s32.totalorder %v1610_v15, 3  ;;  %v1638_v6 = vsel %vm1632_vm2, %v1625_v23, 920167782  ;;  %v1767_v57 = vsub.s32 0, %v1765_v45  ;;  %vm1630_vm4 = vcmp.lt.s32.totalorder %v1610_v15, 2 }
 0x2a2   : > { %v1639_v25 = vsel %vm1631_vm3, %v1622_v17, %v1638_v6  ;;  %v1645_v30 = vshll.u32 %v1605_v2, 8  ;;  %v1634_v19 = vsel %vm1632_vm2, %v1622_v17, 2102212464  ;;  %v1641_v49 = vsel %vm1629_vm15, %v1619_v34, %v1622_v17 }
 0x2a3   : > { %v1640_v16 = vsel %vm1630_vm4, %v1637_v50, %v1639_v25  ;;  %v1642_v8 = vsel %vm1632_vm2, %v1628_v62, 1326507024  ;;  %v1923_v14 = vmin.u32 %v1767_v57, %v1765_v45  ;;  %v1613_v7 = vshrl.u32 %v2062_v61, %v1612_v21 }
 0x2a4   : > { %v1643_v28 = vsel %vm1631_vm3, %v1625_v23, %v1642_v8  ;;  %v3677_v11 = vmul.u32.u64.low %v1645_v30, %v1640_v16  ;;  %v3678_v39 = vmul.u32.u64.high %v1645_v30, %v1640_v16, %v3677_v11  ;;  %v1635_v44 = vsel %vm1631_vm3, %v1619_v34, %v1634_v19 }
 0x2a5   : > { %v1644_v18 = vsel %vm1630_vm4, %v1641_v49, %v1643_v28  ;;  %v1769_v5 = vclz %v1923_v14  ;;  %v1633_v27 = vsel %vm1629_vm15, %v1613_v7, %v1616_v13  ;;  %v1483_v31 = vand.u32 3, %v1482_v29 }
 0x2a6   : > { %v3683_v2 = vmul.u32.u64.low %v1645_v30, %v1644_v18  ;;  %v3684_v0 = vmul.u32.u64.high %v1645_v30, %v1644_v18, %v3683_v2  ;;  %v1636_v61 = vsel %vm1630_vm4, %v1633_v27, %v1635_v44  ;;  %v1655_v37 = vadd.s32 1, %v3678_v39 }
 0x2a7   : > { %v1924_v43 = vadd.s32 4294967294, %v1769_v5  ;;  %v937_v21 = vmul.f32 2.0, %v3385_v55  ;;  %vm1485_vm6 = vcmp.eq.s32.totalorder %v1483_v31, 0  ;;  %v1757_v42 = vadd.s32 %v3612_v60, %v3609_v26 }
 0x2a8   : > { %vm1654_vm7 = vc.u32 %v3684_v0, %v3677_v11  ;;  %v1652_v15 = vmul.u32 %v1645_v30, %v1636_v61  ;;  %vm1488_vm8 = vcmp.eq.s32.totalorder %v1483_v31, 2  ;;  %vm1481_vm9 = vweird.f32 %v3414_v9 }
 0x2a9   : > { %vm1925_vm5 = vcmp.lt.s32.totalorder %v1924_v43, 0  ;;  %v1656_v55 = vsel %vm1654_vm7, %v1655_v37, %v3678_v39  ;;  %v945_v26 = vadd.f32 -1.0, %v937_v21  ;;  %vm1484_vm10 = vcmp.lt.s32.totalorder %v1483_v31, 2 }
 0x2aa   : > { %v1772_v3 = vsel %vm1925_vm5, 0, %v1924_v43  ;;  %v1657_v63 = vadd.s32 %v1656_v55, %v1652_v15  ;;  %vm1703_vm11 = vcmp.lt.s32.totalorder %v3521_v20, 0  ;;  %v1787_v6 = vsub.s32 4, %v3658_v38 }
 0x2ab   : > { %v1773_v24 = vsub.s32 32, %v1772_v3  ;;  %v1777_v22 = vsub.s32 4294967266, %v1772_v3  ;;  %v1774_v51 = vshll.u32 %v1765_v45, %v1772_v3  ;;  %vm1702_vm1 = vcmp.le.f32.partialorder %v1701_v10, 0.7853982 }
 0x2ac   : > { %v2015_v47 = vpop.eup %2014  ;;  %v1658_v13 = vadd.s32 536870912, %v1657_v63  ;;  %v1788_v16 = vsel %vm1703_vm11, %v1787_v6, %v3658_v38  ;;  %v1653_v7 = vadd.s32 %v3677_v11, %v3684_v0  ;;  %v940_v37 = vmul.f32 2.0, %v3487_v58 }
 0x2ad   : > { %v2017_v48 = vpop.eup %2016  ;;  %v1489_v33 = vxor.u32 2147483648, %v2015_v47  ;;  %v1775_v40 = vshrl.u32 %v1757_v42, %v1773_v24  ;;  %v1778_v56 = vadd.s32 127, %v1777_v22  ;;  %v1790_v8 = vsel %vm1702_vm1, 0, %v1788_v16 }
 0x2ae   : > { %v1486_v46 = vxor.u32 2147483648, %v2017_v48  ;;  %v1659_v23 = vshrl.u32 %v1658_v13, 30  ;;  %v1794_v39 = vadd.s32 3, %v1790_v8  ;;  %vm1793_vm3 = vweird.f32 %v3521_v20 }
 0x2af   : > { %v1490_v12 = vsel %vm1488_vm8, %v1489_v33, %v2017_v48  ;;  %v1776_v36 = vor.u32 %v1775_v40, %v1774_v51  ;;  %v1779_v41 = vshll.u32 %v1778_v56, 23  ;;  %v948_v33 = vadd.f32 -1.0, %v940_v37 }
 0x2b0   : > { %v1487_v60 = vsel %vm1485_vm6, %v2015_v47, %v1486_v46  ;;  %v1660_v45 = vshll.u32 %v1659_v23, 30  ;;  %v1795_v2 = vand.u32 3, %v1794_v39  ;;  %vm1599_vm4 = vcmp.lt.s32.totalorder %v3566_v52, 0 }
 0x2b1   : > { %v1491_v35 = vsel %vm1484_vm10, %v1487_v60, %v1490_v12  ;;  %v1780_v17 = vor.u32 4788187, %v1779_v41  ;;  %v1783_v1 = vcvt.s32.f32 %v1776_v36  ;;  %v1683_v58 = vsub.s32 4, %v1659_v23 }
 0x2b2   : > { %v1492_v34 = vsel %vm1481_vm9, nan, %v1491_v35  ;;  %v1661_v9 = vsub.s32 %v1657_v63, %v1660_v45  ;;  %vm1800_vm13 = vcmp.eq.s32.totalorder %v1795_v2, 2  ;;  %vm1797_vm15 = vcmp.eq.s32.totalorder %v1795_v2, 0 }
 0x2b3   : > { %v1816_v32 = vsel %vm1811_vm14, %v945_v26, %v1492_v34  ;;  %v1781_v59 = vand.u32 2147483647, %v1780_v17  ;;  %vm1796_vm2 = vcmp.lt.s32.totalorder %v1795_v2, 2  ;;  %vm1598_vm5 = vcmp.le.f32.partialorder %v1597_v53, 0.7853982 }
 0x2b4   : > { %1825 = vst.msk [vmem:[%s3346_s14 + $0x20] sm:$0xff] %vm1820_vm0, %v1816_v32  ;;  %v1663_v62 = vsub.s32 0, %v1661_v9  ;;  %v1684_v12 = vsel %vm1599_vm4, %v1683_v58, %v1659_v23  ;;  %v939_v60 = vmul.f32 2.0, %v3535_v54  ;;  %vm1689_vm9 = vweird.f32 %v3566_v52 }
 0x2b5   : > { %v1784_v50 = vmul.f32 %v1783_v1, %v1781_v59 }
 0x2b6   : > { %v1919_v25 = vmin.u32 %v1663_v62, %v1661_v9  ;;  %v947_v13 = vadd.f32 -1.0, %v939_v60 }
 0x2b7   : > { %v1785_v29 = vxor.u32 2147483648, %v1784_v50 }
 0x2b8   : > { %v1665_v19 = vclz %v1919_v25 }
 0x2b9   : > { %v1786_v57 = vsel %vm1703_vm11, %v1785_v29, %v1784_v50 }
 0x2ba   : > { %v1789_v30 = vsel %vm1702_vm1, %v3521_v20, %v1786_v57  ;;  %v1920_v49 = vadd.s32 4294967294, %v1665_v19  ;;  %v1686_v20 = vsel %vm1598_vm5, 0, %v1684_v12 }
 0x2bb   : > { %2018 = vcosq.f32 %v1789_v30  ;;  %v1690_v40 = vadd.s32 3, %v1686_v20 }
 0x2bc   : > { %2020 = vsinq.f32 %v1789_v30  ;;  %vm1921_vm12 = vcmp.lt.s32.totalorder %v1920_v49, 0 }
 0x2bd   : > { %v1668_v14 = vsel %vm1921_vm12, 0, %v1920_v49  ;;  %v1691_v56 = vand.u32 3, %v1690_v40 }
 0x2be   : > { %v1669_v28 = vsub.s32 32, %v1668_v14  ;;  %v1673_v18 = vsub.s32 4294967266, %v1668_v14  ;;  %v1670_v10 = vshll.u32 %v1661_v9, %v1668_v14 }
 0x2bf   : > { %vm1696_vm6 = vcmp.eq.s32.totalorder %v1691_v56, 2  ;;  %vm1693_vm7 = vcmp.eq.s32.totalorder %v1691_v56, 0  ;;  %vm1692_vm8 = vcmp.lt.s32.totalorder %v1691_v56, 2 }
 0x2c0   : > { %v1671_v5 = vshrl.u32 %v1653_v7, %v1669_v28  ;;  %v1674_v27 = vadd.s32 127, %v1673_v18 }
 0x2c2   : > { %v1672_v44 = vor.u32 %v1671_v5, %v1670_v10  ;;  %v1675_v31 = vshll.u32 %v1674_v27, 23 }
 0x2c4   : > { %v1676_v43 = vor.u32 4788187, %v1675_v31  ;;  %v1679_v42 = vcvt.s32.f32 %v1672_v44 }
 0x2c6   : > { %v1677_v47 = vand.u32 2147483647, %v1676_v43 }
 0x2c8   : > { %v2019_v61 = vpop.eup %2018  ;;  %v1680_v0 = vmul.f32 %v1679_v42, %v1677_v47 }
 0x2c9   : > { %v2021_v38 = vpop.eup %2020  ;;  %v1801_v21 = vxor.u32 2147483648, %v2019_v61 }
 0x2ca   : > { %v1798_v3 = vxor.u32 2147483648, %v2021_v38  ;;  %v1681_v22 = vxor.u32 2147483648, %v1680_v0 }
 0x2cb   : > { %v1802_v11 = vsel %vm1800_vm13, %v1801_v21, %v2021_v38 }
 0x2cc   : > { %v1799_v48 = vsel %vm1797_vm15, %v2019_v61, %v1798_v3  ;;  %v1682_v51 = vsel %vm1599_vm4, %v1681_v22, %v1680_v0 }
 0x2cd   : > { %v1803_v24 = vsel %vm1796_vm2, %v1799_v48, %v1802_v11  ;;  %v1685_v55 = vsel %vm1598_vm5, %v3566_v52, %v1682_v51 }
 0x2ce   : > { %v1804_v15 = vsel %vm1793_vm3, nan, %v1803_v24  ;;  %2022 = vcosq.f32 %v1685_v55 }
 0x2cf   : > { %v1819_v46 = vsel %vm1811_vm14, %v948_v33, %v1804_v15  ;;  %2024 = vsinq.f32 %v1685_v55 }
 0x2d0   : > { %1828 = vst.msk [vmem:[%s3346_s14 + $0x38] sm:$0xff] %vm1820_vm0, %v1819_v46 }
 0x2db   : > { %v2023_v63 = vpop.eup %2022 }
 0x2dc   : > { %v2025_v26 = vpop.eup %2024  ;;  %v1697_v35 = vxor.u32 2147483648, %v2023_v63 }
 0x2dd   : > { %v1694_v36 = vxor.u32 2147483648, %v2025_v26 }
 0x2de   : > { %v1698_v53 = vsel %vm1696_vm6, %v1697_v35, %v2025_v26 }
 0x2df   : > { %v1695_v41 = vsel %vm1693_vm7, %v2023_v63, %v1694_v36 }
 0x2e0   : > { %v1699_v34 = vsel %vm1692_vm8, %v1695_v41, %v1698_v53 }
 0x2e1   : > { %v1700_v32 = vsel %vm1689_vm9, nan, %v1699_v34 }
 0x2e2   : > { %v1818_v17 = vsel %vm1811_vm14, %v947_v13, %v1700_v32 }
 0x2e3   : > { %1827 = vst.msk [vmem:[%s3346_s14 + $0x30] sm:$0xff] %vm1820_vm0, %v1818_v17 }
 0x2e4 PF: > { %s12_s9 = sadd.s32 1, %s2040_s9  }
 0x2e5   : > { %p9_p4 = scmp.ge.s32.totalorder %s12_s9, 6  }
 0x2e7   :  { %11 = sbr.rel (!%p9_p4) target bundleno = 1 (0x1), region = 58 }

</bundles_post_ra>
